<compile_context>
chip_gen: v5e
topology: v5e:2x2
jax: 0.10.0
libtpu: 0.0.40
codegen_flags: <defaults>
</compile_context>

<pallas_src>
import functools

import jax
import jax.numpy as jnp
from jax.experimental import pallas as pl
from jax.experimental.pallas import tpu as pltpu


def _round_up(a, b):
    return -(-a // b) * b


_TAPS = tuple((dy, dx) for dy in (-1, 0, 1) for dx in (-1, 0, 1))
_CAND_ROW = 8            # first row of the candidate-x block in packed W1 (sublane aligned)


def pack_light_gru2d_params(wg, bg, wc, bc, in_channels, out_channels,
                            dtype=jnp.float32):
    """Pack conv weights/biases once (hoisted out of the per-step call).

    Returns:
      w1: (9, R1, Cout+Cin+1)  per-tap gate weights (rows 0..1, over [h|x]),
          candidate-x weights (rows _CAND_ROW.._CAND_ROW+Cout, over x only) and
          both biases (via the constant-ones activation row, centre tap only).
      w2: (9, Cout, Cout)      per-tap candidate weights applied to r*h.
    """
    cin, cout = in_channels, out_channels
    f32 = jnp.float32
    wg, bg, wc, bc = (a.astype(f32) for a in (wg, bg, wc, bc))

    c1 = cout + cin + 1                      # activation rows: [h | x | ones]
    r1 = _round_up(_CAND_ROW + cout, 8)
    w1 = jnp.zeros((9, r1, c1), f32)
    w2 = jnp.zeros((9, cout, cout), f32)
    for ky in range(3):
        for kx in range(3):
            t = ky * 3 + kx
            # gate conv (out ch 0 = r, 1 = z); torch input order is cat([x, h])
            w1 = w1.at[t, 0:2, 0:cout].set(wg[:, cin:, ky, kx])            # h part
            w1 = w1.at[t, 0:2, cout:cout + cin].set(wg[:, :cin, ky, kx])   # x part
            # candidate conv, x part only (h part acts on r*h in stage 2)
            w1 = w1.at[t, _CAND_ROW:_CAND_ROW + cout,
                       cout:cout + cin].set(wc[:, :cin, ky, kx])
            w2 = w2.at[t].set(wc[:, cin:, ky, kx])
    # biases enter exactly once, through the ones row of the centre (unshifted) tap
    centre = 4
    w1 = w1.at[centre, 0:2, c1 - 1].set(bg)
    w1 = w1.at[centre, _CAND_ROW:_CAND_ROW + cout, c1 - 1].set(bc)
    return w1.astype(dtype), w2.astype(dtype)


def _light_gru2d_kernel(coord_ref, act_ref, w1_ref, w2_ref, o_ref, *, cout, H, W):
    f32 = jnp.float32
    L = act_ref.shape[1]                 # B * H * W lanes in this block
    mxu_dtype = w1_ref.dtype

    act = act_ref[...].astype(f32)       # (Cout+Cin+1, L); exact upcast if bf16
    yy = coord_ref[0:1]                  # (1, L) int32: row index inside the image
    xx = coord_ref[1:2]                  # (1, L) int32: col index inside the image

    # validity of each 3x3 tap (zero-padding conv semantics); also kills any
    # lane-roll wrap across row / sample / block boundaries.
    oks = [(yy + dy >= 0) & (yy + dy < H) & (xx + dx >= 0) & (xx + dx < W)
           for dy, dx in _TAPS]

    def tap(m, t):
        """m shifted by tap t along the flattened-pixel lane axis, masked."""
        dy, dx = _TAPS[t]
        s = dy * W + dx
        if s != 0:
            # pltpu.roll == jnp.roll: roll(m, -s)[p] = m[(p + s) mod L]; every
            # position where p+s leaves the image is zeroed by oks[t].
            m = pltpu.roll(m, (-s) % L, 1)
            m = jnp.where(oks[t], m, 0.0)
        return m.astype(mxu_dtype)

    # stage 1: gate conv on [h|x] (+bias) and candidate-x conv (+bias), fused
    pre = jnp.dot(w1_ref[0], tap(act, 0), preferred_element_type=f32)
    for t in range(1, 9):
        pre = pre + jnp.dot(w1_ref[t], tap(act, t), preferred_element_type=f32)

    r = jax.nn.sigmoid(pre[0:1])                     # (1, L)
    z = jax.nn.sigmoid(pre[1:2])                     # (1, L)
    h = act[0:cout]                                  # hidden state, (Cout, L) f32
    rh = r * h

    # stage 2: candidate conv over r*h, accumulated onto the x part (+bias)
    acc = pre[_CAND_ROW:_CAND_ROW + cout]
    for t in range(9):
        acc = acc + jnp.dot(w2_ref[t], tap(rh, t), preferred_element_type=f32)
    n = jnp.tanh(acc)

    o_ref[...] = (z * h + (1.0 - z) * n).astype(o_ref.dtype)


def _pick_batch_block(n, hw, c_act, c_out, itemsize):
    """Samples folded onto the lane axis per grid step."""
    # double-buffered act+out blocks plus in-kernel f32 temporaries (taps, pre,
    # rh, acc, masks) ~ 10 slabs of c_act rows -- conservative estimate.
    per_sample = hw * (2 * (c_act + c_out) * itemsize + 10 * c_act * 4)
    budget = 24 * 1024 * 1024            # fits v5e/v6e (128 MiB) and v7x (64 MiB) VMEM
    b = max(1, min(64, budget // max(per_sample, 1)))
    if n > 1:
        b = min(b, -(-n // 2))           # keep >=2 grid steps (feed both v7x TCs)
    return int(max(1, min(b, n)))


@jax.jit
def light_gru2d_apply(x, h, w1, w2):
    """LightGRU2d forward.  x: (N, Cin, H, W); h: (N, Cout, H, W) or None;
    w1/w2 from pack_light_gru2d_params.  Returns (N, Cout, H, W)."""
    f32 = jnp.float32
    n, cin, H, W = x.shape
    cout = w2.shape[-1]
    hw = H * W
    c1 = cout + cin + 1
    if h is None:
        h = jnp.zeros((n, cout, H, W), x.dtype)

    b = _pick_batch_block(n, hw, c1, cout, jnp.dtype(w1.dtype).itemsize)
    if (b * hw) % 128 != 0:              # lane-tile rule fallback: one full-size block
        b = n
    steps = -(-n // b)
    n_pad = steps * b
    L = b * hw

    # lane-dense activation slab: rows [h | x | ones], lane index = sample*HW + pixel
    act = jnp.concatenate([h.reshape(n, cout, hw).astype(f32),
                           x.reshape(n, cin, hw).astype(f32),
                           jnp.ones((n, 1, hw), f32)], axis=1)       # (n, c1, hw)
    act = jnp.transpose(act, (1, 0, 2)).reshape(c1, n * hw)
    if n_pad != n:
        act = jnp.pad(act, ((0, 0), (0, (n_pad - n) * hw)))
    act = act.astype(w1.dtype)

    # grid-invariant pixel coordinates for boundary masks (one block, reused)
    yy = jnp.broadcast_to(jnp.arange(H, dtype=jnp.int32)[:, None], (H, W))
    xx = jnp.broadcast_to(jnp.arange(W, dtype=jnp.int32)[None, :], (H, W))
    coord = jnp.tile(jnp.stack([yy.reshape(hw), xx.reshape(hw)], 0), (1, b))  # (2, L)

    r1 = w1.shape[1]
    kernel = functools.partial(_light_gru2d_kernel, cout=cout, H=H, W=W)

    out2d = pl.pallas_call(
        kernel,
        out_shape=jax.ShapeDtypeStruct((cout, n_pad * hw), f32),
        grid_spec=pltpu.PrefetchScalarGridSpec(
            num_scalar_prefetch=0,
            grid=(steps,),
            in_specs=[
                pl.BlockSpec((2, L), lambda i: (0, 0)),              # coord (same each step)
                pl.BlockSpec((c1, L), lambda i: (0, i)),             # activations
                pl.BlockSpec((9, r1, c1), lambda i: (0, 0, 0)),      # packed W1
                pl.BlockSpec((9, cout, cout), lambda i: (0, 0, 0)),  # packed W2
            ],
            out_specs=pl.BlockSpec((cout, L), lambda i: (0, i)),
        ),
        compiler_params=pltpu.CompilerParams(
            dimension_semantics=("parallel",)),
    )(coord, act, w1, w2)

    out = out2d.reshape(cout, n_pad, hw)[:, :n]
    out = jnp.transpose(out, (1, 0, 2)).reshape(n, cout, H, W)
    return out.astype(x.dtype)


def light_gru2d(x, h, wg, bg, wc, bc, *, out_channels, dtype=jnp.float32):
    """One-shot convenience wrapper.  For rollouts, pack once with
    pack_light_gru2d_params and call light_gru2d_apply per step."""
    w1, w2 = pack_light_gru2d_params(wg, bg, wc, bc, x.shape[1], out_channels, dtype)
    return light_gru2d_apply(x, h, w1, w2)


def light_gru2d_ref(x, h, wg, bg, wc, bc):
    """Pure-JAX reference matching the PyTorch forward (NCHW)."""
    dn = ("NCHW", "OIHW", "NCHW")
    hi = jax.lax.Precision.HIGHEST
    combined = jnp.concatenate([x, h], axis=1)
    g = jax.lax.conv_general_dilated(combined, wg, (1, 1), ((1, 1), (1, 1)),
                                     dimension_numbers=dn, precision=hi)
    g = jax.nn.sigmoid(g + bg[None, :, None, None])
    r = g[:, 0:1]
    z = g[:, 1:2]
    combined2 = jnp.concatenate([x, r * h], axis=1)
    c = jax.lax.conv_general_dilated(combined2, wc, (1, 1), ((1, 1), (1, 1)),
                                     dimension_numbers=dn, precision=hi)
    n = jnp.tanh(c + bc[None, :, None, None])
    return z * h + (1.0 - z) * n


if __name__ == "__main__":
    N, Cin, Cout, H, W = 2, 4, 8, 16, 16

    key = jax.random.PRNGKey(0)
    kx, kh, kwg, kbg, kwc, kbc = jax.random.split(key, 6)

    x = jax.random.normal(kx, (N, Cin, H, W), dtype=jnp.float32)
    h = 0.5 * jax.random.normal(kh, (N, Cout, H, W), dtype=jnp.float32)

    # Synthetic parameters (shapes from the module __init__).
    wg = 0.1 * jax.random.normal(kwg, (2, Cin + Cout, 3, 3), dtype=jnp.float32)
    bg = 0.1 * jax.random.normal(kbg, (2,), dtype=jnp.float32)
    wc = 0.1 * jax.random.normal(kwc, (Cout, Cin + Cout, 3, 3), dtype=jnp.float32)
    bc = 0.1 * jax.random.normal(kbc, (Cout,), dtype=jnp.float32)

    ref = light_gru2d_ref(x, h, wg, bg, wc, bc)
    ref0 = light_gru2d_ref(x, jnp.zeros((N, Cout, H, W), x.dtype), wg, bg, wc, bc)

    # f32 path; weights packed once, outside the per-step apply.
    w1, w2 = pack_light_gru2d_params(wg, bg, wc, bc, Cin, Cout)
    out = jax.block_until_ready(light_gru2d_apply(x, h, w1, w2))
    assert out.shape == (N, Cout, H, W)
    assert jnp.allclose(out, ref, rtol=1e-4, atol=1e-4), "mismatch vs reference (h given)"

    out0 = jax.block_until_ready(light_gru2d_apply(x, None, w1, w2))
    assert jnp.allclose(out0, ref0, rtol=1e-4, atol=1e-4), "mismatch vs reference (h=None)"

    # bf16 MXU/DMA path (v6e/v7x): bf16 inputs + f32 accumulation/elementwise.
    # Looser tolerance is inherent to bf16-rounded activations and weights.
    w1b, w2b = pack_light_gru2d_params(wg, bg, wc, bc, Cin, Cout, dtype=jnp.bfloat16)
    outb = jax.block_until_ready(light_gru2d_apply(x, h, w1b, w2b))
    assert jnp.allclose(outb, ref, rtol=0.0, atol=3e-2), "mismatch vs reference (bf16)"

    print("KERNEL_OK")
</pallas_src>

<mosaic_0001>
module attributes {stable_mosaic.version = 11 : i64} {
  func.func @_light_gru2d_kernel(%arg0: i32, %arg1: memref<2x256xi32, #tpu.memory_space<vmem>>, %arg2: memref<13x256xf32, #tpu.memory_space<vmem>>, %arg3: memref<9x16x13xf32, #tpu.memory_space<vmem>>, %arg4: memref<9x8x8xf32, #tpu.memory_space<vmem>>, %arg5: memref<8x256xf32, #tpu.memory_space<vmem>>) attributes {dimension_semantics = [#tpu.dimension_semantics<parallel>], iteration_bounds = array<i64: 2>, scalar_prefetch = 0 : i64, scratch_operands = 0 : i64, tpu.core_type = #tpu.core_type<tc>, window_params = [{pipeline_mode = #tpu.pipeline_mode<synchronous>, transform_indices = @transform_0, window_bounds = array<i64: 2, 256>}, {transform_indices = @transform_1, window_bounds = array<i64: 13, 256>}, {pipeline_mode = #tpu.pipeline_mode<synchronous>, transform_indices = @transform_2, window_bounds = array<i64: 9, 16, 13>}, {pipeline_mode = #tpu.pipeline_mode<synchronous>, transform_indices = @transform_3, window_bounds = array<i64: 9, 8, 8>}, {transform_indices = @transform_4, window_bounds = array<i64: 8, 256>}]} {
    %c0 = arith.constant 0 : index
    %c0_0 = arith.constant 0 : index
    %0 = vector.load %arg2[%c0, %c0_0] : memref<13x256xf32, #tpu.memory_space<vmem>>, vector<13x256xf32>
    %c0_1 = arith.constant 0 : index
    %c0_2 = arith.constant 0 : index
    %1 = vector.load %arg1[%c0_1, %c0_2] : memref<2x256xi32, #tpu.memory_space<vmem>>, vector<1x256xi32>
    %c1 = arith.constant 1 : index
    %c0_3 = arith.constant 0 : index
    %2 = vector.load %arg1[%c1, %c0_3] : memref<2x256xi32, #tpu.memory_space<vmem>>, vector<1x256xi32>
    %c-1_i32 = arith.constant -1 : i32
    %3 = vector.broadcast %c-1_i32 : i32 to vector<1x256xi32>
    %4 = arith.addi %1, %3 : vector<1x256xi32>
    %c0_i32 = arith.constant 0 : i32
    %5 = vector.broadcast %c0_i32 : i32 to vector<1x256xi32>
    %6 = arith.cmpi sge, %4, %5 : vector<1x256xi32>
    %c-1_i32_4 = arith.constant -1 : i32
    %7 = vector.broadcast %c-1_i32_4 : i32 to vector<1x256xi32>
    %8 = arith.addi %1, %7 : vector<1x256xi32>
    %c16_i32 = arith.constant 16 : i32
    %9 = vector.broadcast %c16_i32 : i32 to vector<1x256xi32>
    %10 = arith.cmpi slt, %8, %9 : vector<1x256xi32>
    %11 = arith.andi %6, %10 : vector<1x256xi1>
    %c-1_i32_5 = arith.constant -1 : i32
    %12 = vector.broadcast %c-1_i32_5 : i32 to vector<1x256xi32>
    %13 = arith.addi %2, %12 : vector<1x256xi32>
    %c0_i32_6 = arith.constant 0 : i32
    %14 = vector.broadcast %c0_i32_6 : i32 to vector<1x256xi32>
    %15 = arith.cmpi sge, %13, %14 : vector<1x256xi32>
    %16 = arith.andi %11, %15 : vector<1x256xi1>
    %c-1_i32_7 = arith.constant -1 : i32
    %17 = vector.broadcast %c-1_i32_7 : i32 to vector<1x256xi32>
    %18 = arith.addi %2, %17 : vector<1x256xi32>
    %c16_i32_8 = arith.constant 16 : i32
    %19 = vector.broadcast %c16_i32_8 : i32 to vector<1x256xi32>
    %20 = arith.cmpi slt, %18, %19 : vector<1x256xi32>
    %21 = arith.andi %16, %20 : vector<1x256xi1>
    %c-1_i32_9 = arith.constant -1 : i32
    %22 = vector.broadcast %c-1_i32_9 : i32 to vector<1x256xi32>
    %23 = arith.addi %1, %22 : vector<1x256xi32>
    %c0_i32_10 = arith.constant 0 : i32
    %24 = vector.broadcast %c0_i32_10 : i32 to vector<1x256xi32>
    %25 = arith.cmpi sge, %23, %24 : vector<1x256xi32>
    %c-1_i32_11 = arith.constant -1 : i32
    %26 = vector.broadcast %c-1_i32_11 : i32 to vector<1x256xi32>
    %27 = arith.addi %1, %26 : vector<1x256xi32>
    %c16_i32_12 = arith.constant 16 : i32
    %28 = vector.broadcast %c16_i32_12 : i32 to vector<1x256xi32>
    %29 = arith.cmpi slt, %27, %28 : vector<1x256xi32>
    %30 = arith.andi %25, %29 : vector<1x256xi1>
    %c0_i32_13 = arith.constant 0 : i32
    %31 = vector.broadcast %c0_i32_13 : i32 to vector<1x256xi32>
    %32 = arith.addi %2, %31 : vector<1x256xi32>
    %c0_i32_14 = arith.constant 0 : i32
    %33 = vector.broadcast %c0_i32_14 : i32 to vector<1x256xi32>
    %34 = arith.cmpi sge, %32, %33 : vector<1x256xi32>
    %35 = arith.andi %30, %34 : vector<1x256xi1>
    %c0_i32_15 = arith.constant 0 : i32
    %36 = vector.broadcast %c0_i32_15 : i32 to vector<1x256xi32>
    %37 = arith.addi %2, %36 : vector<1x256xi32>
    %c16_i32_16 = arith.constant 16 : i32
    %38 = vector.broadcast %c16_i32_16 : i32 to vector<1x256xi32>
    %39 = arith.cmpi slt, %37, %38 : vector<1x256xi32>
    %40 = arith.andi %35, %39 : vector<1x256xi1>
    %c-1_i32_17 = arith.constant -1 : i32
    %41 = vector.broadcast %c-1_i32_17 : i32 to vector<1x256xi32>
    %42 = arith.addi %1, %41 : vector<1x256xi32>
    %c0_i32_18 = arith.constant 0 : i32
    %43 = vector.broadcast %c0_i32_18 : i32 to vector<1x256xi32>
    %44 = arith.cmpi sge, %42, %43 : vector<1x256xi32>
    %c-1_i32_19 = arith.constant -1 : i32
    %45 = vector.broadcast %c-1_i32_19 : i32 to vector<1x256xi32>
    %46 = arith.addi %1, %45 : vector<1x256xi32>
    %c16_i32_20 = arith.constant 16 : i32
    %47 = vector.broadcast %c16_i32_20 : i32 to vector<1x256xi32>
    %48 = arith.cmpi slt, %46, %47 : vector<1x256xi32>
    %49 = arith.andi %44, %48 : vector<1x256xi1>
    %c1_i32 = arith.constant 1 : i32
    %50 = vector.broadcast %c1_i32 : i32 to vector<1x256xi32>
    %51 = arith.addi %2, %50 : vector<1x256xi32>
    %c0_i32_21 = arith.constant 0 : i32
    %52 = vector.broadcast %c0_i32_21 : i32 to vector<1x256xi32>
    %53 = arith.cmpi sge, %51, %52 : vector<1x256xi32>
    %54 = arith.andi %49, %53 : vector<1x256xi1>
    %c1_i32_22 = arith.constant 1 : i32
    %55 = vector.broadcast %c1_i32_22 : i32 to vector<1x256xi32>
    %56 = arith.addi %2, %55 : vector<1x256xi32>
    %c16_i32_23 = arith.constant 16 : i32
    %57 = vector.broadcast %c16_i32_23 : i32 to vector<1x256xi32>
    %58 = arith.cmpi slt, %56, %57 : vector<1x256xi32>
    %59 = arith.andi %54, %58 : vector<1x256xi1>
    %c0_i32_24 = arith.constant 0 : i32
    %60 = vector.broadcast %c0_i32_24 : i32 to vector<1x256xi32>
    %61 = arith.addi %1, %60 : vector<1x256xi32>
    %c0_i32_25 = arith.constant 0 : i32
    %62 = vector.broadcast %c0_i32_25 : i32 to vector<1x256xi32>
    %63 = arith.cmpi sge, %61, %62 : vector<1x256xi32>
    %c0_i32_26 = arith.constant 0 : i32
    %64 = vector.broadcast %c0_i32_26 : i32 to vector<1x256xi32>
    %65 = arith.addi %1, %64 : vector<1x256xi32>
    %c16_i32_27 = arith.constant 16 : i32
    %66 = vector.broadcast %c16_i32_27 : i32 to vector<1x256xi32>
    %67 = arith.cmpi slt, %65, %66 : vector<1x256xi32>
    %68 = arith.andi %63, %67 : vector<1x256xi1>
    %c-1_i32_28 = arith.constant -1 : i32
    %69 = vector.broadcast %c-1_i32_28 : i32 to vector<1x256xi32>
    %70 = arith.addi %2, %69 : vector<1x256xi32>
    %c0_i32_29 = arith.constant 0 : i32
    %71 = vector.broadcast %c0_i32_29 : i32 to vector<1x256xi32>
    %72 = arith.cmpi sge, %70, %71 : vector<1x256xi32>
    %73 = arith.andi %68, %72 : vector<1x256xi1>
    %c-1_i32_30 = arith.constant -1 : i32
    %74 = vector.broadcast %c-1_i32_30 : i32 to vector<1x256xi32>
    %75 = arith.addi %2, %74 : vector<1x256xi32>
    %c16_i32_31 = arith.constant 16 : i32
    %76 = vector.broadcast %c16_i32_31 : i32 to vector<1x256xi32>
    %77 = arith.cmpi slt, %75, %76 : vector<1x256xi32>
    %78 = arith.andi %73, %77 : vector<1x256xi1>
    %c0_i32_32 = arith.constant 0 : i32
    %79 = vector.broadcast %c0_i32_32 : i32 to vector<1x256xi32>
    %80 = arith.addi %1, %79 : vector<1x256xi32>
    %c0_i32_33 = arith.constant 0 : i32
    %81 = vector.broadcast %c0_i32_33 : i32 to vector<1x256xi32>
    %82 = arith.cmpi sge, %80, %81 : vector<1x256xi32>
    %c0_i32_34 = arith.constant 0 : i32
    %83 = vector.broadcast %c0_i32_34 : i32 to vector<1x256xi32>
    %84 = arith.addi %1, %83 : vector<1x256xi32>
    %c16_i32_35 = arith.constant 16 : i32
    %85 = vector.broadcast %c16_i32_35 : i32 to vector<1x256xi32>
    %86 = arith.cmpi slt, %84, %85 : vector<1x256xi32>
    %87 = arith.andi %82, %86 : vector<1x256xi1>
    %c1_i32_36 = arith.constant 1 : i32
    %88 = vector.broadcast %c1_i32_36 : i32 to vector<1x256xi32>
    %89 = arith.addi %2, %88 : vector<1x256xi32>
    %c0_i32_37 = arith.constant 0 : i32
    %90 = vector.broadcast %c0_i32_37 : i32 to vector<1x256xi32>
    %91 = arith.cmpi sge, %89, %90 : vector<1x256xi32>
    %92 = arith.andi %87, %91 : vector<1x256xi1>
    %c1_i32_38 = arith.constant 1 : i32
    %93 = vector.broadcast %c1_i32_38 : i32 to vector<1x256xi32>
    %94 = arith.addi %2, %93 : vector<1x256xi32>
    %c16_i32_39 = arith.constant 16 : i32
    %95 = vector.broadcast %c16_i32_39 : i32 to vector<1x256xi32>
    %96 = arith.cmpi slt, %94, %95 : vector<1x256xi32>
    %97 = arith.andi %92, %96 : vector<1x256xi1>
    %c1_i32_40 = arith.constant 1 : i32
    %98 = vector.broadcast %c1_i32_40 : i32 to vector<1x256xi32>
    %99 = arith.addi %1, %98 : vector<1x256xi32>
    %c0_i32_41 = arith.constant 0 : i32
    %100 = vector.broadcast %c0_i32_41 : i32 to vector<1x256xi32>
    %101 = arith.cmpi sge, %99, %100 : vector<1x256xi32>
    %c1_i32_42 = arith.constant 1 : i32
    %102 = vector.broadcast %c1_i32_42 : i32 to vector<1x256xi32>
    %103 = arith.addi %1, %102 : vector<1x256xi32>
    %c16_i32_43 = arith.constant 16 : i32
    %104 = vector.broadcast %c16_i32_43 : i32 to vector<1x256xi32>
    %105 = arith.cmpi slt, %103, %104 : vector<1x256xi32>
    %106 = arith.andi %101, %105 : vector<1x256xi1>
    %c-1_i32_44 = arith.constant -1 : i32
    %107 = vector.broadcast %c-1_i32_44 : i32 to vector<1x256xi32>
    %108 = arith.addi %2, %107 : vector<1x256xi32>
    %c0_i32_45 = arith.constant 0 : i32
    %109 = vector.broadcast %c0_i32_45 : i32 to vector<1x256xi32>
    %110 = arith.cmpi sge, %108, %109 : vector<1x256xi32>
    %111 = arith.andi %106, %110 : vector<1x256xi1>
    %c-1_i32_46 = arith.constant -1 : i32
    %112 = vector.broadcast %c-1_i32_46 : i32 to vector<1x256xi32>
    %113 = arith.addi %2, %112 : vector<1x256xi32>
    %c16_i32_47 = arith.constant 16 : i32
    %114 = vector.broadcast %c16_i32_47 : i32 to vector<1x256xi32>
    %115 = arith.cmpi slt, %113, %114 : vector<1x256xi32>
    %116 = arith.andi %111, %115 : vector<1x256xi1>
    %c1_i32_48 = arith.constant 1 : i32
    %117 = vector.broadcast %c1_i32_48 : i32 to vector<1x256xi32>
    %118 = arith.addi %1, %117 : vector<1x256xi32>
    %c0_i32_49 = arith.constant 0 : i32
    %119 = vector.broadcast %c0_i32_49 : i32 to vector<1x256xi32>
    %120 = arith.cmpi sge, %118, %119 : vector<1x256xi32>
    %c1_i32_50 = arith.constant 1 : i32
    %121 = vector.broadcast %c1_i32_50 : i32 to vector<1x256xi32>
    %122 = arith.addi %1, %121 : vector<1x256xi32>
    %c16_i32_51 = arith.constant 16 : i32
    %123 = vector.broadcast %c16_i32_51 : i32 to vector<1x256xi32>
    %124 = arith.cmpi slt, %122, %123 : vector<1x256xi32>
    %125 = arith.andi %120, %124 : vector<1x256xi1>
    %c0_i32_52 = arith.constant 0 : i32
    %126 = vector.broadcast %c0_i32_52 : i32 to vector<1x256xi32>
    %127 = arith.addi %2, %126 : vector<1x256xi32>
    %c0_i32_53 = arith.constant 0 : i32
    %128 = vector.broadcast %c0_i32_53 : i32 to vector<1x256xi32>
    %129 = arith.cmpi sge, %127, %128 : vector<1x256xi32>
    %130 = arith.andi %125, %129 : vector<1x256xi1>
    %c0_i32_54 = arith.constant 0 : i32
    %131 = vector.broadcast %c0_i32_54 : i32 to vector<1x256xi32>
    %132 = arith.addi %2, %131 : vector<1x256xi32>
    %c16_i32_55 = arith.constant 16 : i32
    %133 = vector.broadcast %c16_i32_55 : i32 to vector<1x256xi32>
    %134 = arith.cmpi slt, %132, %133 : vector<1x256xi32>
    %135 = arith.andi %130, %134 : vector<1x256xi1>
    %c1_i32_56 = arith.constant 1 : i32
    %136 = vector.broadcast %c1_i32_56 : i32 to vector<1x256xi32>
    %137 = arith.addi %1, %136 : vector<1x256xi32>
    %c0_i32_57 = arith.constant 0 : i32
    %138 = vector.broadcast %c0_i32_57 : i32 to vector<1x256xi32>
    %139 = arith.cmpi sge, %137, %138 : vector<1x256xi32>
    %c1_i32_58 = arith.constant 1 : i32
    %140 = vector.broadcast %c1_i32_58 : i32 to vector<1x256xi32>
    %141 = arith.addi %1, %140 : vector<1x256xi32>
    %c16_i32_59 = arith.constant 16 : i32
    %142 = vector.broadcast %c16_i32_59 : i32 to vector<1x256xi32>
    %143 = arith.cmpi slt, %141, %142 : vector<1x256xi32>
    %144 = arith.andi %139, %143 : vector<1x256xi1>
    %c1_i32_60 = arith.constant 1 : i32
    %145 = vector.broadcast %c1_i32_60 : i32 to vector<1x256xi32>
    %146 = arith.addi %2, %145 : vector<1x256xi32>
    %c0_i32_61 = arith.constant 0 : i32
    %147 = vector.broadcast %c0_i32_61 : i32 to vector<1x256xi32>
    %148 = arith.cmpi sge, %146, %147 : vector<1x256xi32>
    %149 = arith.andi %144, %148 : vector<1x256xi1>
    %c1_i32_62 = arith.constant 1 : i32
    %150 = vector.broadcast %c1_i32_62 : i32 to vector<1x256xi32>
    %151 = arith.addi %2, %150 : vector<1x256xi32>
    %c16_i32_63 = arith.constant 16 : i32
    %152 = vector.broadcast %c16_i32_63 : i32 to vector<1x256xi32>
    %153 = arith.cmpi slt, %151, %152 : vector<1x256xi32>
    %154 = arith.andi %149, %153 : vector<1x256xi1>
    %c0_64 = arith.constant 0 : index
    %c0_65 = arith.constant 0 : index
    %c0_66 = arith.constant 0 : index
    %155 = vector.load %arg3[%c0_64, %c0_65, %c0_66] : memref<9x16x13xf32, #tpu.memory_space<vmem>>, vector<1x16x13xf32>
    %156 = vector.shape_cast %155 : vector<1x16x13xf32> to vector<16x13xf32>
    %c17_i32 = arith.constant 17 : i32
    %157 = tpu.dynamic_rotate %0 by %c17_i32 dim 1 : vector<13x256xf32>, i32 -> vector<13x256xf32>
    %cst = arith.constant 0.000000e+00 : f32
    %158 = vector.shape_cast %21 : vector<1x256xi1> to vector<1x256xi1>
    %159 = vector.broadcast %158 : vector<1x256xi1> to vector<13x256xi1>
    %160 = vector.broadcast %cst : f32 to vector<13x256xf32>
    %161 = arith.select %159, %157, %160 : vector<13x256xi1>, vector<13x256xf32>
    %cst_67 = arith.constant dense<0.000000e+00> : vector<16x256xf32>
    %162 = tpu.matmul %156, %161, %cst_67 {dimension_numbers = #tpu.dot_dimension_numbers<[1], [0], [0], [1], [0, 0, 1, 1], [], []>} : vector<16x13xf32>, vector<13x256xf32>, vector<16x256xf32> -> vector<16x256xf32>
    %c1_68 = arith.constant 1 : index
    %c0_69 = arith.constant 0 : index
    %c0_70 = arith.constant 0 : index
    %163 = vector.load %arg3[%c1_68, %c0_69, %c0_70] : memref<9x16x13xf32, #tpu.memory_space<vmem>>, vector<1x16x13xf32>
    %164 = vector.shape_cast %163 : vector<1x16x13xf32> to vector<16x13xf32>
    %c16_i32_71 = arith.constant 16 : i32
    %165 = tpu.dynamic_rotate %0 by %c16_i32_71 dim 1 : vector<13x256xf32>, i32 -> vector<13x256xf32>
    %cst_72 = arith.constant 0.000000e+00 : f32
    %166 = vector.shape_cast %40 : vector<1x256xi1> to vector<1x256xi1>
    %167 = vector.broadcast %166 : vector<1x256xi1> to vector<13x256xi1>
    %168 = vector.broadcast %cst_72 : f32 to vector<13x256xf32>
    %169 = arith.select %167, %165, %168 : vector<13x256xi1>, vector<13x256xf32>
    %cst_73 = arith.constant dense<0.000000e+00> : vector<16x256xf32>
    %170 = tpu.matmul %164, %169, %cst_73 {dimension_numbers = #tpu.dot_dimension_numbers<[1], [0], [0], [1], [0, 0, 1, 1], [], []>} : vector<16x13xf32>, vector<13x256xf32>, vector<16x256xf32> -> vector<16x256xf32>
    %171 = arith.addf %162, %170 : vector<16x256xf32>
    %c2 = arith.constant 2 : index
    %c0_74 = arith.constant 0 : index
    %c0_75 = arith.constant 0 : index
    %172 = vector.load %arg3[%c2, %c0_74, %c0_75] : memref<9x16x13xf32, #tpu.memory_space<vmem>>, vector<1x16x13xf32>
    %173 = vector.shape_cast %172 : vector<1x16x13xf32> to vector<16x13xf32>
    %c15_i32 = arith.constant 15 : i32
    %174 = tpu.dynamic_rotate %0 by %c15_i32 dim 1 : vector<13x256xf32>, i32 -> vector<13x256xf32>
    %cst_76 = arith.constant 0.000000e+00 : f32
    %175 = vector.shape_cast %59 : vector<1x256xi1> to vector<1x256xi1>
    %176 = vector.broadcast %175 : vector<1x256xi1> to vector<13x256xi1>
    %177 = vector.broadcast %cst_76 : f32 to vector<13x256xf32>
    %178 = arith.select %176, %174, %177 : vector<13x256xi1>, vector<13x256xf32>
    %cst_77 = arith.constant dense<0.000000e+00> : vector<16x256xf32>
    %179 = tpu.matmul %173, %178, %cst_77 {dimension_numbers = #tpu.dot_dimension_numbers<[1], [0], [0], [1], [0, 0, 1, 1], [], []>} : vector<16x13xf32>, vector<13x256xf32>, vector<16x256xf32> -> vector<16x256xf32>
    %180 = arith.addf %171, %179 : vector<16x256xf32>
    %c3 = arith.constant 3 : index
    %c0_78 = arith.constant 0 : index
    %c0_79 = arith.constant 0 : index
    %181 = vector.load %arg3[%c3, %c0_78, %c0_79] : memref<9x16x13xf32, #tpu.memory_space<vmem>>, vector<1x16x13xf32>
    %182 = vector.shape_cast %181 : vector<1x16x13xf32> to vector<16x13xf32>
    %c1_i32_80 = arith.constant 1 : i32
    %183 = tpu.dynamic_rotate %0 by %c1_i32_80 dim 1 : vector<13x256xf32>, i32 -> vector<13x256xf32>
    %cst_81 = arith.constant 0.000000e+00 : f32
    %184 = vector.shape_cast %78 : vector<1x256xi1> to vector<1x256xi1>
    %185 = vector.broadcast %184 : vector<1x256xi1> to vector<13x256xi1>
    %186 = vector.broadcast %cst_81 : f32 to vector<13x256xf32>
    %187 = arith.select %185, %183, %186 : vector<13x256xi1>, vector<13x256xf32>
    %cst_82 = arith.constant dense<0.000000e+00> : vector<16x256xf32>
    %188 = tpu.matmul %182, %187, %cst_82 {dimension_numbers = #tpu.dot_dimension_numbers<[1], [0], [0], [1], [0, 0, 1, 1], [], []>} : vector<16x13xf32>, vector<13x256xf32>, vector<16x256xf32> -> vector<16x256xf32>
    %189 = arith.addf %180, %188 : vector<16x256xf32>
    %c4 = arith.constant 4 : index
    %c0_83 = arith.constant 0 : index
    %c0_84 = arith.constant 0 : index
    %190 = vector.load %arg3[%c4, %c0_83, %c0_84] : memref<9x16x13xf32, #tpu.memory_space<vmem>>, vector<1x16x13xf32>
    %191 = vector.shape_cast %190 : vector<1x16x13xf32> to vector<16x13xf32>
    %cst_85 = arith.constant dense<0.000000e+00> : vector<16x256xf32>
    %192 = tpu.matmul %191, %0, %cst_85 {dimension_numbers = #tpu.dot_dimension_numbers<[1], [0], [0], [1], [0, 0, 1, 1], [], []>} : vector<16x13xf32>, vector<13x256xf32>, vector<16x256xf32> -> vector<16x256xf32>
    %193 = arith.addf %189, %192 : vector<16x256xf32>
    %c5 = arith.constant 5 : index
    %c0_86 = arith.constant 0 : index
    %c0_87 = arith.constant 0 : index
    %194 = vector.load %arg3[%c5, %c0_86, %c0_87] : memref<9x16x13xf32, #tpu.memory_space<vmem>>, vector<1x16x13xf32>
    %195 = vector.shape_cast %194 : vector<1x16x13xf32> to vector<16x13xf32>
    %c255_i32 = arith.constant 255 : i32
    %196 = tpu.dynamic_rotate %0 by %c255_i32 dim 1 : vector<13x256xf32>, i32 -> vector<13x256xf32>
    %cst_88 = arith.constant 0.000000e+00 : f32
    %197 = vector.shape_cast %97 : vector<1x256xi1> to vector<1x256xi1>
    %198 = vector.broadcast %197 : vector<1x256xi1> to vector<13x256xi1>
    %199 = vector.broadcast %cst_88 : f32 to vector<13x256xf32>
    %200 = arith.select %198, %196, %199 : vector<13x256xi1>, vector<13x256xf32>
    %cst_89 = arith.constant dense<0.000000e+00> : vector<16x256xf32>
    %201 = tpu.matmul %195, %200, %cst_89 {dimension_numbers = #tpu.dot_dimension_numbers<[1], [0], [0], [1], [0, 0, 1, 1], [], []>} : vector<16x13xf32>, vector<13x256xf32>, vector<16x256xf32> -> vector<16x256xf32>
    %202 = arith.addf %193, %201 : vector<16x256xf32>
    %c6 = arith.constant 6 : index
    %c0_90 = arith.constant 0 : index
    %c0_91 = arith.constant 0 : index
    %203 = vector.load %arg3[%c6, %c0_90, %c0_91] : memref<9x16x13xf32, #tpu.memory_space<vmem>>, vector<1x16x13xf32>
    %204 = vector.shape_cast %203 : vector<1x16x13xf32> to vector<16x13xf32>
    %c241_i32 = arith.constant 241 : i32
    %205 = tpu.dynamic_rotate %0 by %c241_i32 dim 1 : vector<13x256xf32>, i32 -> vector<13x256xf32>
    %cst_92 = arith.constant 0.000000e+00 : f32
    %206 = vector.shape_cast %116 : vector<1x256xi1> to vector<1x256xi1>
    %207 = vector.broadcast %206 : vector<1x256xi1> to vector<13x256xi1>
    %208 = vector.broadcast %cst_92 : f32 to vector<13x256xf32>
    %209 = arith.select %207, %205, %208 : vector<13x256xi1>, vector<13x256xf32>
    %cst_93 = arith.constant dense<0.000000e+00> : vector<16x256xf32>
    %210 = tpu.matmul %204, %209, %cst_93 {dimension_numbers = #tpu.dot_dimension_numbers<[1], [0], [0], [1], [0, 0, 1, 1], [], []>} : vector<16x13xf32>, vector<13x256xf32>, vector<16x256xf32> -> vector<16x256xf32>
    %211 = arith.addf %202, %210 : vector<16x256xf32>
    %c7 = arith.constant 7 : index
    %c0_94 = arith.constant 0 : index
    %c0_95 = arith.constant 0 : index
    %212 = vector.load %arg3[%c7, %c0_94, %c0_95] : memref<9x16x13xf32, #tpu.memory_space<vmem>>, vector<1x16x13xf32>
    %213 = vector.shape_cast %212 : vector<1x16x13xf32> to vector<16x13xf32>
    %c240_i32 = arith.constant 240 : i32
    %214 = tpu.dynamic_rotate %0 by %c240_i32 dim 1 : vector<13x256xf32>, i32 -> vector<13x256xf32>
    %cst_96 = arith.constant 0.000000e+00 : f32
    %215 = vector.shape_cast %135 : vector<1x256xi1> to vector<1x256xi1>
    %216 = vector.broadcast %215 : vector<1x256xi1> to vector<13x256xi1>
    %217 = vector.broadcast %cst_96 : f32 to vector<13x256xf32>
    %218 = arith.select %216, %214, %217 : vector<13x256xi1>, vector<13x256xf32>
    %cst_97 = arith.constant dense<0.000000e+00> : vector<16x256xf32>
    %219 = tpu.matmul %213, %218, %cst_97 {dimension_numbers = #tpu.dot_dimension_numbers<[1], [0], [0], [1], [0, 0, 1, 1], [], []>} : vector<16x13xf32>, vector<13x256xf32>, vector<16x256xf32> -> vector<16x256xf32>
    %220 = arith.addf %211, %219 : vector<16x256xf32>
    %c8 = arith.constant 8 : index
    %c0_98 = arith.constant 0 : index
    %c0_99 = arith.constant 0 : index
    %221 = vector.load %arg3[%c8, %c0_98, %c0_99] : memref<9x16x13xf32, #tpu.memory_space<vmem>>, vector<1x16x13xf32>
    %222 = vector.shape_cast %221 : vector<1x16x13xf32> to vector<16x13xf32>
    %c239_i32 = arith.constant 239 : i32
    %223 = tpu.dynamic_rotate %0 by %c239_i32 dim 1 : vector<13x256xf32>, i32 -> vector<13x256xf32>
    %cst_100 = arith.constant 0.000000e+00 : f32
    %224 = vector.shape_cast %154 : vector<1x256xi1> to vector<1x256xi1>
    %225 = vector.broadcast %224 : vector<1x256xi1> to vector<13x256xi1>
    %226 = vector.broadcast %cst_100 : f32 to vector<13x256xf32>
    %227 = arith.select %225, %223, %226 : vector<13x256xi1>, vector<13x256xf32>
    %cst_101 = arith.constant dense<0.000000e+00> : vector<16x256xf32>
    %228 = tpu.matmul %222, %227, %cst_101 {dimension_numbers = #tpu.dot_dimension_numbers<[1], [0], [0], [1], [0, 0, 1, 1], [], []>} : vector<16x13xf32>, vector<13x256xf32>, vector<16x256xf32> -> vector<16x256xf32>
    %229 = arith.addf %220, %228 : vector<16x256xf32>
    %230 = vector.extract_strided_slice %229 {offsets = [0, 0], sizes = [1, 256], strides = [1, 1]} : vector<16x256xf32> to vector<1x256xf32>
    %231 = arith.negf %230 : vector<1x256xf32>
    %232 = math.exp %231 : vector<1x256xf32>
    %cst_102 = arith.constant 1.000000e+00 : f32
    %233 = vector.broadcast %cst_102 : f32 to vector<1x256xf32>
    %234 = arith.addf %233, %232 : vector<1x256xf32>
    %235 = arith.divf %233, %234 : vector<1x256xf32>
    %236 = vector.extract_strided_slice %229 {offsets = [1, 0], sizes = [1, 256], strides = [1, 1]} : vector<16x256xf32> to vector<1x256xf32>
    %237 = arith.negf %236 : vector<1x256xf32>
    %238 = math.exp %237 : vector<1x256xf32>
    %cst_103 = arith.constant 1.000000e+00 : f32
    %239 = vector.broadcast %cst_103 : f32 to vector<1x256xf32>
    %240 = arith.addf %239, %238 : vector<1x256xf32>
    %241 = arith.divf %239, %240 : vector<1x256xf32>
    %242 = vector.extract_strided_slice %0 {offsets = [0, 0], sizes = [8, 256], strides = [1, 1]} : vector<13x256xf32> to vector<8x256xf32>
    %243 = vector.broadcast %235 : vector<1x256xf32> to vector<8x256xf32>
    %244 = arith.mulf %243, %242 : vector<8x256xf32>
    %245 = vector.extract_strided_slice %229 {offsets = [8, 0], sizes = [8, 256], strides = [1, 1]} : vector<16x256xf32> to vector<8x256xf32>
    %c0_104 = arith.constant 0 : index
    %c0_105 = arith.constant 0 : index
    %c0_106 = arith.constant 0 : index
    %246 = vector.load %arg4[%c0_104, %c0_105, %c0_106] : memref<9x8x8xf32, #tpu.memory_space<vmem>>, vector<1x8x8xf32>
    %247 = vector.shape_cast %246 : vector<1x8x8xf32> to vector<8x8xf32>
    %c17_i32_107 = arith.constant 17 : i32
    %248 = tpu.dynamic_rotate %244 by %c17_i32_107 dim 1 : vector<8x256xf32>, i32 -> vector<8x256xf32>
    %cst_108 = arith.constant 0.000000e+00 : f32
    %249 = vector.shape_cast %21 : vector<1x256xi1> to vector<1x256xi1>
    %250 = vector.broadcast %249 : vector<1x256xi1> to vector<8x256xi1>
    %251 = vector.broadcast %cst_108 : f32 to vector<8x256xf32>
    %252 = arith.select %250, %248, %251 : vector<8x256xi1>, vector<8x256xf32>
    %cst_109 = arith.constant dense<0.000000e+00> : vector<8x256xf32>
    %253 = tpu.matmul %247, %252, %cst_109 {dimension_numbers = #tpu.dot_dimension_numbers<[1], [0], [0], [1], [0, 0, 1, 1], [], []>} : vector<8x8xf32>, vector<8x256xf32>, vector<8x256xf32> -> vector<8x256xf32>
    %254 = arith.addf %245, %253 : vector<8x256xf32>
    %c1_110 = arith.constant 1 : index
    %c0_111 = arith.constant 0 : index
    %c0_112 = arith.constant 0 : index
    %255 = vector.load %arg4[%c1_110, %c0_111, %c0_112] : memref<9x8x8xf32, #tpu.memory_space<vmem>>, vector<1x8x8xf32>
    %256 = vector.shape_cast %255 : vector<1x8x8xf32> to vector<8x8xf32>
    %c16_i32_113 = arith.constant 16 : i32
    %257 = tpu.dynamic_rotate %244 by %c16_i32_113 dim 1 : vector<8x256xf32>, i32 -> vector<8x256xf32>
    %cst_114 = arith.constant 0.000000e+00 : f32
    %258 = vector.shape_cast %40 : vector<1x256xi1> to vector<1x256xi1>
    %259 = vector.broadcast %258 : vector<1x256xi1> to vector<8x256xi1>
    %260 = vector.broadcast %cst_114 : f32 to vector<8x256xf32>
    %261 = arith.select %259, %257, %260 : vector<8x256xi1>, vector<8x256xf32>
    %cst_115 = arith.constant dense<0.000000e+00> : vector<8x256xf32>
    %262 = tpu.matmul %256, %261, %cst_115 {dimension_numbers = #tpu.dot_dimension_numbers<[1], [0], [0], [1], [0, 0, 1, 1], [], []>} : vector<8x8xf32>, vector<8x256xf32>, vector<8x256xf32> -> vector<8x256xf32>
    %263 = arith.addf %254, %262 : vector<8x256xf32>
    %c2_116 = arith.constant 2 : index
    %c0_117 = arith.constant 0 : index
    %c0_118 = arith.constant 0 : index
    %264 = vector.load %arg4[%c2_116, %c0_117, %c0_118] : memref<9x8x8xf32, #tpu.memory_space<vmem>>, vector<1x8x8xf32>
    %265 = vector.shape_cast %264 : vector<1x8x8xf32> to vector<8x8xf32>
    %c15_i32_119 = arith.constant 15 : i32
    %266 = tpu.dynamic_rotate %244 by %c15_i32_119 dim 1 : vector<8x256xf32>, i32 -> vector<8x256xf32>
    %cst_120 = arith.constant 0.000000e+00 : f32
    %267 = vector.shape_cast %59 : vector<1x256xi1> to vector<1x256xi1>
    %268 = vector.broadcast %267 : vector<1x256xi1> to vector<8x256xi1>
    %269 = vector.broadcast %cst_120 : f32 to vector<8x256xf32>
    %270 = arith.select %268, %266, %269 : vector<8x256xi1>, vector<8x256xf32>
    %cst_121 = arith.constant dense<0.000000e+00> : vector<8x256xf32>
    %271 = tpu.matmul %265, %270, %cst_121 {dimension_numbers = #tpu.dot_dimension_numbers<[1], [0], [0], [1], [0, 0, 1, 1], [], []>} : vector<8x8xf32>, vector<8x256xf32>, vector<8x256xf32> -> vector<8x256xf32>
    %272 = arith.addf %263, %271 : vector<8x256xf32>
    %c3_122 = arith.constant 3 : index
    %c0_123 = arith.constant 0 : index
    %c0_124 = arith.constant 0 : index
    %273 = vector.load %arg4[%c3_122, %c0_123, %c0_124] : memref<9x8x8xf32, #tpu.memory_space<vmem>>, vector<1x8x8xf32>
    %274 = vector.shape_cast %273 : vector<1x8x8xf32> to vector<8x8xf32>
    %c1_i32_125 = arith.constant 1 : i32
    %275 = tpu.dynamic_rotate %244 by %c1_i32_125 dim 1 : vector<8x256xf32>, i32 -> vector<8x256xf32>
    %cst_126 = arith.constant 0.000000e+00 : f32
    %276 = vector.shape_cast %78 : vector<1x256xi1> to vector<1x256xi1>
    %277 = vector.broadcast %276 : vector<1x256xi1> to vector<8x256xi1>
    %278 = vector.broadcast %cst_126 : f32 to vector<8x256xf32>
    %279 = arith.select %277, %275, %278 : vector<8x256xi1>, vector<8x256xf32>
    %cst_127 = arith.constant dense<0.000000e+00> : vector<8x256xf32>
    %280 = tpu.matmul %274, %279, %cst_127 {dimension_numbers = #tpu.dot_dimension_numbers<[1], [0], [0], [1], [0, 0, 1, 1], [], []>} : vector<8x8xf32>, vector<8x256xf32>, vector<8x256xf32> -> vector<8x256xf32>
    %281 = arith.addf %272, %280 : vector<8x256xf32>
    %c4_128 = arith.constant 4 : index
    %c0_129 = arith.constant 0 : index
    %c0_130 = arith.constant 0 : index
    %282 = vector.load %arg4[%c4_128, %c0_129, %c0_130] : memref<9x8x8xf32, #tpu.memory_space<vmem>>, vector<1x8x8xf32>
    %283 = vector.shape_cast %282 : vector<1x8x8xf32> to vector<8x8xf32>
    %cst_131 = arith.constant dense<0.000000e+00> : vector<8x256xf32>
    %284 = tpu.matmul %283, %244, %cst_131 {dimension_numbers = #tpu.dot_dimension_numbers<[1], [0], [0], [1], [0, 0, 1, 1], [], []>} : vector<8x8xf32>, vector<8x256xf32>, vector<8x256xf32> -> vector<8x256xf32>
    %285 = arith.addf %281, %284 : vector<8x256xf32>
    %c5_132 = arith.constant 5 : index
    %c0_133 = arith.constant 0 : index
    %c0_134 = arith.constant 0 : index
    %286 = vector.load %arg4[%c5_132, %c0_133, %c0_134] : memref<9x8x8xf32, #tpu.memory_space<vmem>>, vector<1x8x8xf32>
    %287 = vector.shape_cast %286 : vector<1x8x8xf32> to vector<8x8xf32>
    %c255_i32_135 = arith.constant 255 : i32
    %288 = tpu.dynamic_rotate %244 by %c255_i32_135 dim 1 : vector<8x256xf32>, i32 -> vector<8x256xf32>
    %cst_136 = arith.constant 0.000000e+00 : f32
    %289 = vector.shape_cast %97 : vector<1x256xi1> to vector<1x256xi1>
    %290 = vector.broadcast %289 : vector<1x256xi1> to vector<8x256xi1>
    %291 = vector.broadcast %cst_136 : f32 to vector<8x256xf32>
    %292 = arith.select %290, %288, %291 : vector<8x256xi1>, vector<8x256xf32>
    %cst_137 = arith.constant dense<0.000000e+00> : vector<8x256xf32>
    %293 = tpu.matmul %287, %292, %cst_137 {dimension_numbers = #tpu.dot_dimension_numbers<[1], [0], [0], [1], [0, 0, 1, 1], [], []>} : vector<8x8xf32>, vector<8x256xf32>, vector<8x256xf32> -> vector<8x256xf32>
    %294 = arith.addf %285, %293 : vector<8x256xf32>
    %c6_138 = arith.constant 6 : index
    %c0_139 = arith.constant 0 : index
    %c0_140 = arith.constant 0 : index
    %295 = vector.load %arg4[%c6_138, %c0_139, %c0_140] : memref<9x8x8xf32, #tpu.memory_space<vmem>>, vector<1x8x8xf32>
    %296 = vector.shape_cast %295 : vector<1x8x8xf32> to vector<8x8xf32>
    %c241_i32_141 = arith.constant 241 : i32
    %297 = tpu.dynamic_rotate %244 by %c241_i32_141 dim 1 : vector<8x256xf32>, i32 -> vector<8x256xf32>
    %cst_142 = arith.constant 0.000000e+00 : f32
    %298 = vector.shape_cast %116 : vector<1x256xi1> to vector<1x256xi1>
    %299 = vector.broadcast %298 : vector<1x256xi1> to vector<8x256xi1>
    %300 = vector.broadcast %cst_142 : f32 to vector<8x256xf32>
    %301 = arith.select %299, %297, %300 : vector<8x256xi1>, vector<8x256xf32>
    %cst_143 = arith.constant dense<0.000000e+00> : vector<8x256xf32>
    %302 = tpu.matmul %296, %301, %cst_143 {dimension_numbers = #tpu.dot_dimension_numbers<[1], [0], [0], [1], [0, 0, 1, 1], [], []>} : vector<8x8xf32>, vector<8x256xf32>, vector<8x256xf32> -> vector<8x256xf32>
    %303 = arith.addf %294, %302 : vector<8x256xf32>
    %c7_144 = arith.constant 7 : index
    %c0_145 = arith.constant 0 : index
    %c0_146 = arith.constant 0 : index
    %304 = vector.load %arg4[%c7_144, %c0_145, %c0_146] : memref<9x8x8xf32, #tpu.memory_space<vmem>>, vector<1x8x8xf32>
    %305 = vector.shape_cast %304 : vector<1x8x8xf32> to vector<8x8xf32>
    %c240_i32_147 = arith.constant 240 : i32
    %306 = tpu.dynamic_rotate %244 by %c240_i32_147 dim 1 : vector<8x256xf32>, i32 -> vector<8x256xf32>
    %cst_148 = arith.constant 0.000000e+00 : f32
    %307 = vector.shape_cast %135 : vector<1x256xi1> to vector<1x256xi1>
    %308 = vector.broadcast %307 : vector<1x256xi1> to vector<8x256xi1>
    %309 = vector.broadcast %cst_148 : f32 to vector<8x256xf32>
    %310 = arith.select %308, %306, %309 : vector<8x256xi1>, vector<8x256xf32>
    %cst_149 = arith.constant dense<0.000000e+00> : vector<8x256xf32>
    %311 = tpu.matmul %305, %310, %cst_149 {dimension_numbers = #tpu.dot_dimension_numbers<[1], [0], [0], [1], [0, 0, 1, 1], [], []>} : vector<8x8xf32>, vector<8x256xf32>, vector<8x256xf32> -> vector<8x256xf32>
    %312 = arith.addf %303, %311 : vector<8x256xf32>
    %c8_150 = arith.constant 8 : index
    %c0_151 = arith.constant 0 : index
    %c0_152 = arith.constant 0 : index
    %313 = vector.load %arg4[%c8_150, %c0_151, %c0_152] : memref<9x8x8xf32, #tpu.memory_space<vmem>>, vector<1x8x8xf32>
    %314 = vector.shape_cast %313 : vector<1x8x8xf32> to vector<8x8xf32>
    %c239_i32_153 = arith.constant 239 : i32
    %315 = tpu.dynamic_rotate %244 by %c239_i32_153 dim 1 : vector<8x256xf32>, i32 -> vector<8x256xf32>
    %cst_154 = arith.constant 0.000000e+00 : f32
    %316 = vector.shape_cast %154 : vector<1x256xi1> to vector<1x256xi1>
    %317 = vector.broadcast %316 : vector<1x256xi1> to vector<8x256xi1>
    %318 = vector.broadcast %cst_154 : f32 to vector<8x256xf32>
    %319 = arith.select %317, %315, %318 : vector<8x256xi1>, vector<8x256xf32>
    %cst_155 = arith.constant dense<0.000000e+00> : vector<8x256xf32>
    %320 = tpu.matmul %314, %319, %cst_155 {dimension_numbers = #tpu.dot_dimension_numbers<[1], [0], [0], [1], [0, 0, 1, 1], [], []>} : vector<8x8xf32>, vector<8x256xf32>, vector<8x256xf32> -> vector<8x256xf32>
    %321 = arith.addf %312, %320 : vector<8x256xf32>
    %322 = math.tanh %321 : vector<8x256xf32>
    %323 = vector.broadcast %241 : vector<1x256xf32> to vector<8x256xf32>
    %324 = arith.mulf %323, %242 : vector<8x256xf32>
    %cst_156 = arith.constant 1.000000e+00 : f32
    %325 = vector.broadcast %cst_156 : f32 to vector<1x256xf32>
    %326 = arith.subf %325, %241 : vector<1x256xf32>
    %327 = vector.broadcast %326 : vector<1x256xf32> to vector<8x256xf32>
    %328 = arith.mulf %327, %322 : vector<8x256xf32>
    %329 = arith.addf %324, %328 : vector<8x256xf32>
    %c0_157 = arith.constant 0 : index
    %c0_158 = arith.constant 0 : index
    %330 = vector.load %arg5[%c0_157, %c0_158] : memref<8x256xf32, #tpu.memory_space<vmem>>, vector<8x256xf32>
    tpu.vector_store %arg5[%c0_157, %c0_158], %329 {strides = array<i32>} : memref<8x256xf32, #tpu.memory_space<vmem>>, vector<8x256xf32>,
    return
  }
  func.func @transform_0(%arg0: i32) -> (i32, i32) {
    %c0_i32 = arith.constant 0 : i32
    %c0_i32_0 = arith.constant 0 : i32
    %c0_i32_1 = arith.constant 0 : i32
    return %c0_i32, %c0_i32_0 : i32, i32
  }
  func.func @transform_1(%arg0: i32) -> (i32, i32) {
    %c0_i32 = arith.constant 0 : i32
    %c0_i32_0 = arith.constant 0 : i32
    return %c0_i32, %arg0 : i32, i32
  }
  func.func @transform_2(%arg0: i32) -> (i32, i32, i32) {
    %c0_i32 = arith.constant 0 : i32
    %c0_i32_0 = arith.constant 0 : i32
    %c0_i32_1 = arith.constant 0 : i32
    %c0_i32_2 = arith.constant 0 : i32
    return %c0_i32, %c0_i32_0, %c0_i32_1 : i32, i32, i32
  }
  func.func @transform_3(%arg0: i32) -> (i32, i32, i32) {
    %c0_i32 = arith.constant 0 : i32
    %c0_i32_0 = arith.constant 0 : i32
    %c0_i32_1 = arith.constant 0 : i32
    %c0_i32_2 = arith.constant 0 : i32
    return %c0_i32, %c0_i32_0, %c0_i32_1 : i32, i32, i32
  }
  func.func @transform_4(%arg0: i32) -> (i32, i32) {
    %c0_i32 = arith.constant 0 : i32
    %c0_i32_0 = arith.constant 0 : i32
    return %c0_i32, %arg0 : i32, i32
  }
}

</mosaic_0001>

<bundles_post_ra>
// kernel: light_gru2d_apply.1
= control target key start
LH: loop header
LB: loop body
LE: loop exit
PB: predicated region body
PF: predicated region fallthrough
CT: control target
= control target key end

     0   :  { %s1881_s15 = smov 0   ;;  %s1883_s16 = smov 0   ;;  %s2582_s0 = inlined_call_operand.vmem [shape: s32[2,256], index: 0, kind: input, shape index: {}]   ;;  %s2583_s1 = inlined_call_operand.vmem [shape: f32[13,512], index: 1, kind: input, shape index: {}]   ;;  %s2584_s2 = inlined_call_operand.vmem [shape: f32[9,16,13], index: 2, kind: input, shape index: {}]   ;;  %s2585_s3 = inlined_call_operand.vmem [shape: f32[9,8,8], index: 3, kind: input, shape index: {}]   ;;  %s2586_s4 = inlined_call_operand.vmem [shape: f32[8,512], index: 4, kind: output, shape index: {}]  }
   0x1   :  { %s1885_s17 = smov 0  }
   0x2 LB: > { %s1631_s18 = sadd.s32 4294967295, %s1845_s17   ;;  %s1898_s19 = sadd.s32 1, %s1845_s17   ;;  %s1845_s17 = sphi %s1885_s17, %s2718_s17   ;;  %s1841_s16 = sphi %s1883_s16, %s2717_s16   ;;  %s1837_s15 = sphi %s1881_s15, %s2716_s15  }
   0x3   : > { %s39_s20 = ssub.s32 %s1845_s17, %s1898_s19  ;;  %s42_s21 = sadd.s32 1, %s1841_s16 }
   0x4   : > { %p40_p0 = scmp.eq.s32.totalorder %s39_s20, 0  ;;  %p49_p1 = scmp.ne.s32.totalorder %s1841_s16, %s1837_s15 }
   0x5   : > { %p50_p2 = scmp.eq.s32.totalorder %s1845_s17, 0  ;;  %p1634_p4 = scmp.ge.s32.totalorder %s1845_s17, 2 }
   0x6   : > { %s1907_s22 = scalar_select %p40_p0, %s1841_s16, %s42_s21  }
   0x7   : > { %p51_p3 = por %p50_p2, %p49_p1  ;;  %152 = sbr.rel (%p1634_p4) target bundleno = 20 (0x14), region = 28 }
   0xc   : > { %155 = sbr.rel (!%p51_p3) target bundleno = 20 (0x14), region = 32  ;;  %s157_s23 = sand.u32 (%p51_p3), 1, %s1841_s16  }
   0xd   : > { %s1775_s24 = sshll.u32 (%p51_p3), %s1845_s17, 4  ;;  %s1635_s25 = sshll.u32 (%p51_p3), %s157_s23, 5 }
   0xe   : > { %s162_s28 = scalar_lea.vmem (%p51_p3), %s2583_s1, %s1775_s24  ;;  %s159_s29 = scalar_lea.vmem (%p51_p3), [#allocation2], %s1635_s25 }
   0xf   : > { %v175_v0 = vld [vmem:[%s162_s28] sm:$0xff] (%p51_p3)  ;;  %v177_v1 = vld [vmem:[%s162_s28 + $0x8] sm:$0xff] (%p51_p3) }
  0x10   : > { %v179_v2 = vld [vmem:[%s162_s28 + $0x20] sm:$0xff] (%p51_p3)  ;;  %176 = vst [vmem:[%s159_s29] sm:$0xff] (%p51_p3), %v175_v0  ;;  %v181_v3 = vld [vmem:[%s162_s28 + $0x28] sm:$0xff] (%p51_p3) }
  0x11   : > { %178 = vst [vmem:[%s159_s29 + $0x8] sm:$0xff] %v177_v1 }
  0x12   : > { %180 = vst [vmem:[%s159_s29 + $0x10] sm:$0xff] %v179_v2 }
  0x13   : > { %182 = vst [vmem:[%s159_s29 + $0x18] sm:$0xff] %v181_v3 }
  0x14 PF: > { %p1638_p5 = scmp.ge.s32.totalorder %s1845_s17, 1  ;;  %p187_p6 = scmp.lt.s32.totalorder %s1845_s17, 3 }
  0x16   : > { %p188_p7 = pnand %p1638_p5, %p187_p6 }
  0x17   : > { %s194_s30 = sand.u32 (!%p188_p7), 1, %s1837_s15   ;;  %s1847_s7 = smov (!%p188_p7), 16  }
  0x18   : > { %191 = sbr.rel (%p188_p7) target bundleno = 687 (0x2af), region = 55  ;;  %s1639_s5 = sshll.u32 (!%p188_p7), %s194_s30, 5 }
  0x19   : > { %s1918_s6 = scalar_lea.vmem (!%p188_p7), [#allocation2], %s1639_s5  ;;  %s1848_s8 = smov (!%p188_p7), 17  }
  0x1a   : > { %s1849_s9 = smov (!%p188_p7), 15   ;;  %s1850_s10 = smov (!%p188_p7), 1  }
  0x1b   : > { %s1851_s11 = smov (!%p188_p7), 127   ;;  %s1852_s12 = smov (!%p188_p7), 113  }
  0x1c   : > { %s1853_s13 = smov (!%p188_p7), 112   ;;  %s1854_s14 = smov (!%p188_p7), 111  }
  0x1d   : > { %v1921_v4 = vld [vmem:[%s1918_s6 + $0x10] sm:$0x1f]  ;;  %v1924_v5 = vld [vmem:[%s1918_s6] sm:$0xff]  ;;  %v1933_v6 = vld [vmem:[%s1918_s6 + $0x8] sm:$0xff]  ;;  %v278_v13 = vlaneseq  ;;  %v1855_v15 = vmov 0   ;;  %vm2590_vm10 = vcmask 1044480  }
  0x1e   : > { %299 = vrot.lane.b32.xlu0 %v1921_v4, %s1847_s7  ;;  %297 = vrot.lane.b32.xlu1 %v1924_v5, %s1847_s7  ;;  %v1936_v7 = vld [vmem:[%s1918_s6 + $0x18] sm:$0x1f]  ;;  %v1995_v8 = vld [vmem:[%s2582_s0] ss:$2 sm:$0x3]  ;;  %v2654_v59 = vmov 0 }
  0x1f   : > { %272 = vrot.lane.b32.xlu2 %v1921_v4, %s1848_s8  ;;  %v2000_v9 = vld [vmem:[%s2582_s0 + $0x1] ss:$2 sm:$0x3]  ;;  %v233_v10 = vadd.s32 4294967295, %v1995_v8  ;;  %v2023_v17 = vand.u32 127, %v278_v13  ;;  %v258_v38 = vadd.s32 1, %v1995_v8 }
  0x20   : > { %v2008_v11 = vadd.s32 4294967295, %v2000_v9  ;;  %vm2588_vm11 = vcmp.ge.s32.totalorder %v2000_v9, 0  ;;  %vm2587_vm13 = vcmp.lt.s32.totalorder %v2000_v9, 16  ;;  %v2056_v33 = vadd.s32 1, %v2000_v9  ;;  %v1643_v44 = vld [vmem:[%s2584_s2 + $0x10] sm:$0xff]  ;;  %v268_v51 = vld [vmem:[%s2584_s2] sm:$0xff] }
  0x21   : > { %vm234_vm0 = vcmp.ge.s32.totalorder %v233_v10, 0  ;;  %vm235_vm1 = vcmp.lt.s32.totalorder %v233_v10, 16  ;;  %vm2593_vm7 = vcmp.lt.s32.totalorder %v2023_v17, 17  ;;  %vm2591_vm15 = vcmp.lt.s32.totalorder %v2023_v17, 16  ;;  %v1644_v55 = vld [vmem:[%s2584_s2 + $0x18] sm:$0xff]  ;;  %v269_v0 = vld [vmem:[%s2584_s2 + $0x8] sm:$0xff] }
  0x22   : > { %vm2010_vm2 = vmand %vm234_vm0, %vm235_vm1  ;;  %vm238_vm3 = vcmp.ge.s32.totalorder %v2008_v11, 0  ;;  %vm2592_vm5 = vcmp.lt.s32.totalorder %v2008_v11, 16  ;;  %v1735_v20 = vld [vmem:[%s2585_s3 + $0x8] sm:$0xff]  ;;  %v1740_v34 = vld [vmem:[%s2585_s3 + $0x10] sm:$0xff]  ;;  %s1640_s21 = sshll.u32 %s1631_s18, 1 }
  0x23   : > { %vm239_vm4 = vmand %vm2010_vm2, %vm238_vm3  ;;  %v1745_v61 = vld [vmem:[%s2585_s3 + $0x18] sm:$0xff]  ;;  %p221_p8 = scmp.lt.s32.totalorder %s1640_s21, 3 }
  0x24   : > { %vm241_vm6 = vmand %vm239_vm4, %vm2592_vm5  ;;  %vm2589_vm4 = vcmp.ge.s32.totalorder %v2056_v33, 0 }
  0x25   : > { %v285_v16 = vsel %vm241_vm6, 1, %v1855_v15  ;;  %vm243_vm12 = vmand %vm2010_vm2, %vm2588_vm11  ;;  %vm259_vm11 = vcmp.ge.s32.totalorder %v258_v38, 0  ;;  %s2720_s21 = smov (!%p221_p8, %s1640_s21), 3 }
  0x26   : > { %303 = vrot.lane.b32.xlu0 %v1936_v7, %s1847_s7  ;;  %301 = vrot.lane.b32.xlu1 %v1933_v6, %s1847_s7  ;;  %v286_v18 = vperm.slane %v285_v16, 0  ;;  %v287_v19 = vperm.slane %v285_v16, 1  ;;  %vm245_vm14 = vmand %vm243_vm12, %vm2587_vm13  ;;  %vm2594_vm12 = vcmp.lt.s32.totalorder %v2056_v33, 16  ;;  %vm251_vm13 = vcmp.ge.s32.totalorder %v1995_v8, 0  ;;  %s1641_s17 = sshll.u32 %s2720_s21, 3 }
  0x27   : > { %276 = vrot.lane.b32.xlu2 %v1936_v7, %s1848_s8  ;;  %v310_v30 = vsel %vm245_vm14, 1, %v1855_v15  ;;  %vm248_vm6 = vmand %vm2010_vm2, %vm2589_vm4  ;;  %vm2602_vm14 = vcmask 105472   ;;  %vm252_vm2 = vcmp.lt.s32.totalorder %v1995_v8, 16  ;;  %vm260_vm4 = vcmp.lt.s32.totalorder %v258_v38, 16 }
  0x28   : > { %vm2026_vm8 = vcmp.eq.s32.totalorder %v286_v18, 1  ;;  %vm2030_vm9 = vcmp.eq.s32.totalorder %v287_v19, 1  ;;  %v311_v31 = vperm.slane %v310_v30, 0  ;;  %v312_v32 = vperm.slane %v310_v30, 1  ;;  %vm2107_vm5 = vmand %vm259_vm11, %vm260_vm4 }
  0x29   : > { %v2635_v19 = vmov 0 }
  0x2a   : > { %vm2059_vm0 = vcmp.eq.s32.totalorder %v311_v31, 1  ;;  %vm2063_vm1 = vcmp.eq.s32.totalorder %v312_v32, 1  ;;  %v2642_v31 = vmov 0  ;;  %v2644_v32 = vmov 0 }
  0x2e   : > { %270 = vrot.lane.b32.xlu0 %v1924_v5, %s1848_s8  ;;  %274 = vrot.lane.b32.xlu1 %v1933_v6, %s1848_s8 }
  0x2f   : > { %442 = vrot.lane.b32.xlu2 %v1921_v4, %s1849_s9 }
  0x36   : > { %446 = vrot.lane.b32.xlu0 %v1936_v7, %s1849_s9  ;;  %440 = vrot.lane.b32.xlu1 %v1924_v5, %s1849_s9 }
  0x37   : > { %444 = vrot.lane.b32.xlu2 %v1933_v6, %s1849_s9 }
  0x3e   : > { %529 = vrot.lane.b32.xlu0 %v1921_v4, %s1850_s10  ;;  %533 = vrot.lane.b32.xlu1 %v1936_v7, %s1850_s10 }
  0x3f   : > { %527 = vrot.lane.b32.xlu2 %v1924_v5, %s1850_s10 }
  0x46   : > { %531 = vrot.lane.b32.xlu0 %v1933_v6, %s1850_s10  ;;  %681 = vrot.lane.b32.xlu1 %v1921_v4, %s1851_s11 }
  0x47   : > { %685 = vrot.lane.b32.xlu2 %v1936_v7, %s1851_s11 }
  0x4e   : > { %679 = vrot.lane.b32.xlu0 %v1924_v5, %s1851_s11  ;;  %683 = vrot.lane.b32.xlu1 %v1933_v6, %s1851_s11 }
  0x4f   : > { %768 = vrot.lane.b32.xlu2 %v1921_v4, %s1852_s12 }
  0x56   : > { %772 = vrot.lane.b32.xlu0 %v1936_v7, %s1852_s12  ;;  %766 = vrot.lane.b32.xlu1 %v1924_v5, %s1852_s12 }
  0x57   : > { %770 = vrot.lane.b32.xlu2 %v1933_v6, %s1852_s12 }
  0x5e   : > { %855 = vrot.lane.b32.xlu0 %v1921_v4, %s1853_s13  ;;  %859 = vrot.lane.b32.xlu1 %v1936_v7, %s1853_s13 }
  0x5f   : > { %853 = vrot.lane.b32.xlu2 %v1924_v5, %s1853_s13 }
  0x66   : > { %857 = vrot.lane.b32.xlu0 %v1933_v6, %s1853_s13  ;;  %942 = vrot.lane.b32.xlu1 %v1921_v4, %s1854_s14 }
  0x67   : > { %946 = vrot.lane.b32.xlu2 %v1936_v7, %s1854_s14 }
  0x6e   : > { %940 = vrot.lane.b32.xlu0 %v1924_v5, %s1854_s14  ;;  %944 = vrot.lane.b32.xlu1 %v1933_v6, %s1854_s14 }
  0x79   : > { %v273_v14 = vpop.permute.xlu2 %272 }
  0x81   : > { %v277_v22 = vpop.permute.xlu2 %276 }
  0x82   : > { %v284_v23 = vsel %vm2593_vm7, %v277_v22, %v273_v14  ;;  %v282_v24 = vsel %vm2593_vm7, %v273_v14, %v277_v22  ;;  %v2637_v22 = vmov 0 }
  0x83   : > { %v292_v25 = vsel %vm2026_vm8, %v284_v23, 0.0  ;;  %v293_v26 = vsel %vm2030_vm9, %v282_v24, 0.0 }
  0x84   : > { %1653 = vmatpush.msk.msra.mxu2 %vm2590_vm10, %v292_v25  ;;  %1657 = vmatpush.msk.msra.mxu3 %vm2590_vm10, %v293_v26 }
  0x89   : > { %v2052_v27 = vpop.permute.xlu2 %442 }
  0x90   : > { %v300_v28 = vpop.permute.xlu0 %299  ;;  %v298_v29 = vpop.permute.xlu1 %297 }
  0x91   : > { %v2073_v41 = vpop.permute.xlu2 %444 }
  0x98   : > { %v304_v36 = vpop.permute.xlu0 %303  ;;  %v302_v37 = vpop.permute.xlu1 %301 }
  0x99   : > { %v309_v39 = vsel %vm2591_vm15, %v304_v36, %v300_v28  ;;  %v307_v40 = vsel %vm2591_vm15, %v300_v28, %v304_v36  ;;  %v308_v45 = vsel %vm2591_vm15, %v302_v37, %v298_v29  ;;  %v306_v46 = vsel %vm2591_vm15, %v298_v29, %v302_v37  ;;  %vm2103_vm15 = vmand %vm251_vm13, %vm252_vm2  ;;  %v2132_v58 = vpop.permute.xlu2 %527 }
  0x9a   : > { %v317_v42 = vsel %vm2059_vm0, %v309_v39, 0.0  ;;  %v318_v43 = vsel %vm2063_vm1, %v307_v40, 0.0  ;;  %vm254_vm11 = vmand %vm2103_vm15, %vm238_vm3  ;;  %vm2623_vm13 = vcmp.lt.s32.totalorder %v2008_v11, 16  ;;  %v1661_v11 = vld [vmem:[%s2584_s2 + $0x20] sm:$0xff]  ;;  %v1671_v39 = vld [vmem:[%s2584_s2 + $0x30] sm:$0xff] }
  0x9b   : > { %1645 = vmatpush.msk.msra.mxu0 %vm2590_vm10, %v317_v42  ;;  %1649 = vmatpush.msk.msra.mxu1 %vm2590_vm10, %v318_v43  ;;  %vm250_vm10 = vmand %vm248_vm6, %vm2594_vm12 }
  0x9c   : > { %v453_v52 = vsel %vm250_vm10, 1, %v1855_v15  ;;  %vm262_vm10 = vmand %vm2107_vm5, %vm238_vm3 }
  0x9d   : > { %1646 = vmatpush.msk.msra.mxu0 %vm2059_vm0, %v308_v45  ;;  %1650 = vmatpush.msk.msra.mxu1 %vm2063_vm1, %v306_v46  ;;  %v454_v56 = vperm.slane %v453_v52, 0  ;;  %v455_v57 = vperm.slane %v453_v52, 1  ;;  %vm2140_vm4 = vmand %vm262_vm10, %vm2623_vm13  ;;  %v1681_v46 = vld [vmem:[%s2584_s2 + $0x40] sm:$0xff] }
  0x9e   : > { %1647 = vmatmul.msk.f32.vlgmr.msra.gmra.mxu0 %vm2602_vm14, %v1643_v44  ;;  %1651 = vmatmul.msk.f32.vlgmr.msra.gmra.mxu1 %vm2602_vm14, %v1643_v44  ;;  %vm2626_vm6 = vmmov %vm2623_vm13  ;;  %vm2632_vm13 = vcmask 1044480  }
  0x9f   : > { %vm255_vm2 = vmand %vm254_vm11, %vm2626_vm6  ;;  %vm2149_vm12 = vcmp.eq.s32.totalorder %v454_v56, 1  ;;  %vm2153_vm3 = vcmp.eq.s32.totalorder %v455_v57, 1  ;;  %vm2631_vm11 = vcmp.ge.s32.totalorder %v2056_v33, 0  ;;  %v1682_v57 = vld [vmem:[%s2584_s2 + $0x48] sm:$0xff] }
  0xa0   : > { %v271_v49 = vpop.permute.xlu0 %270  ;;  %v275_v50 = vpop.permute.xlu1 %274  ;;  %v540_v1 = vsel %vm255_vm2, 1, %v1855_v15  ;;  %vm256_vm10 = vmand %vm2103_vm15, %vm2631_vm11  ;;  %vm2634_vm15 = vcmp.lt.s32.totalorder %v2056_v33, 16  ;;  %vm2596_vm11 = vcmp.lt.s32.totalorder %v2023_v17, 1 }
  0xa1   : > { %v283_v53 = vsel %vm2593_vm7, %v275_v50, %v271_v49  ;;  %v281_v54 = vsel %vm2593_vm7, %v271_v49, %v275_v50  ;;  %vm2595_vm7 = vcmp.lt.s32.totalorder %v2023_v17, 15  ;;  %v541_v12 = vperm.slane %v540_v1, 0  ;;  %vm2633_vm6 = vmmov %vm2632_vm13  ;;  %v686_v18 = vpop.permute.xlu2 %685  ;;  %v1672_v50 = vld [vmem:[%s2584_s2 + $0x38] sm:$0xff] }
  0xa2   : > { %1654 = vmatpush.msk.msra.mxu2 %vm2026_vm8, %v283_v53  ;;  %1658 = vmatpush.msk.msra.mxu3 %vm2030_vm9, %v281_v54  ;;  %v542_v13 = vperm.slane %v540_v1, 1  ;;  %vm257_vm2 = vmand %vm256_vm10, %vm2634_vm15 }
  0xa3   : > { %1659 = vmatmul.msk.f32.vlgmr.msra.gmra.mxu3 %vm2602_vm14, %v268_v51  ;;  %1655 = vmatmul.msk.f32.vlgmr.msra.gmra.mxu2 %vm2602_vm14, %v268_v51  ;;  %v692_v25 = vsel %vm257_vm2, 1, %v1855_v15  ;;  %vm2597_vm2 = vcmp.lt.s32.totalorder %v2023_v17, 127  ;;  %v779_v51 = vsel %vm2140_vm4, 1, %v1855_v15  ;;  %vm2651_vm4 = vcmp.lt.s32.totalorder %v2000_v9, 16 }
  0xa4   : > { %v693_v29 = vperm.slane %v692_v25, 0  ;;  %v694_v30 = vperm.slane %v692_v25, 1  ;;  %v781_v56 = vperm.slane %v779_v51, 1 }
  0xa6   : > { %1648 = vmatmul.msk.f32.gmra.mxu0 %vm2602_vm14, %v1644_v55  ;;  %1652 = vmatmul.msk.f32.gmra.mxu1 %vm2602_vm14, %v1644_v55  ;;  %v780_v55 = vperm.slane %v779_v51, 0 }
  0xa8   : > { %v447_v62 = vpop.permute.xlu0 %446  ;;  %v441_v63 = vpop.permute.xlu1 %440 }
  0xa9   : > { %v450_v2 = vsel %vm2595_vm7, %v2052_v27, %v447_v62  ;;  %v452_v3 = vsel %vm2595_vm7, %v447_v62, %v2052_v27  ;;  %v451_v14 = vsel %vm2595_vm7, %v2073_v41, %v441_v63  ;;  %v449_v16 = vsel %vm2595_vm7, %v441_v63, %v2073_v41  ;;  %v769_v36 = vpop.permute.xlu2 %768 }
  0xaa   : > { %v460_v8 = vsel %vm2149_vm12, %v452_v3, 0.0  ;;  %v461_v10 = vsel %vm2153_vm3, %v450_v2, 0.0  ;;  %vm2639_vm7 = vcmask 1044480  }
  0xab   : > { %1660 = vmatmul.msk.f32.gmra.mxu3 %vm2602_vm14, %v269_v0  ;;  %1663 = vmatpush.msk.msrb.mxu0 %vm2632_vm13, %v460_v8  ;;  %vm2197_vm13 = vcmp.eq.s32.totalorder %v541_v12, 1  ;;  %vm2640_vm10 = vmmov %vm2639_vm7 }
  0xac   : > { %1667 = vmatpush.msk.msrb.mxu1 %vm2633_vm6, %v461_v10  ;;  %1656 = vmatmul.msk.f32.gmra.mxu2 %vm2602_vm14, %v269_v0  ;;  %v2636_v19 = vsel %vm2197_vm13, 4294967295, %v2635_v19  ;;  %vm2201_vm6 = vcmp.eq.s32.totalorder %v542_v13, 1  ;;  %vm2641_vm15 = vmmov %vm2639_vm7  ;;  %v1699_v13 = vld [vmem:[%s2584_s2 + $0x60] sm:$0xff] }
  0xad   : > { %1664 = vmatpush.msk.msrb.mxu0 %vm2149_vm12, %v451_v14  ;;  %v2638_v22 = vsel %vm2201_vm6, 4294967295, %v2637_v22 }
  0xae   : > { %1668 = vmatpush.msk.msrb.mxu1 %vm2153_vm3, %v449_v16  ;;  %1665 = vmatmul.msk.f32.vlgmr.msrb.gmra.mxu0 %vm2602_vm14, %v1661_v11  ;;  %v2662_v16 = vmov 0 }
  0xaf   : > { %1669 = vmatmul.msk.f32.vlgmr.msrb.gmra.mxu1 %vm2602_vm14, %v1661_v11  ;;  %1683 = vmatpush.msk.msra.mxu0 %vm2639_vm7, %v1921_v4 }
  0xb0   : > { %v530_v23 = vpop.permute.xlu0 %529  ;;  %v534_v24 = vpop.permute.xlu1 %533  ;;  %1686 = vmatpush.msk.msra.mxu1 %vm2640_vm10, %v1936_v7  ;;  %v1662_v7 = vld [vmem:[%s2584_s2 + $0x28] sm:$0xff]  ;;  %vm2228_vm10 = vcmp.eq.s32.totalorder %v693_v29, 1 }
  0xb1   : > { %v537_v26 = vsel %vm2596_vm11, %v530_v23, %v534_v24  ;;  %v539_v27 = vsel %vm2596_vm11, %v534_v24, %v530_v23  ;;  %641 = vmatpush.msra.mxu0 %v1924_v5  ;;  %v2643_v31 = vsel %vm2228_vm10, 4294967295, %v2642_v31  ;;  %vm2232_vm11 = vcmp.eq.s32.totalorder %v694_v30, 1  ;;  %v771_v54 = vpop.permute.xlu2 %770  ;;  %v1690_v24 = vld [vmem:[%s2584_s2 + $0x58] sm:$0xff] }
  0xb2   : > { %v547_v28 = vsel %vm2197_vm13, %v539_v27, 0.0  ;;  %v548_v4 = vsel %vm2201_vm6, %v537_v26, 0.0  ;;  %664 = vmatpush.msra.mxu1 %v1933_v6  ;;  %v2645_v32 = vsel %vm2232_vm11, 4294967295, %v2644_v32 }
  0xb3   : > { %1673 = vmatpush.msk.msrb.mxu2 %vm2639_vm7, %v547_v28  ;;  %1677 = vmatpush.msk.msrb.mxu3 %vm2641_vm15, %v548_v4  ;;  %vm2646_vm7 = vcmp.lt.s32.totalorder %v2023_v17, 1 }
  0xb4   : > { %vm2647_vm15 = vmmov %vm2646_vm7 }
  0xb6   : > { %1666 = vmatmul.msk.f32.gmra.mxu0 %vm2602_vm14, %v1662_v7 }
  0xb7   : > { %1670 = vmatmul.msk.f32.gmra.mxu1 %vm2602_vm14, %v1662_v7 }
  0xb8   : > { %v532_v37 = vpop.permute.xlu0 %531  ;;  %v682_v38 = vpop.permute.xlu1 %681 }
  0xb9   : > { %v689_v40 = vsel %vm2597_vm2, %v682_v38, %v686_v18  ;;  %v691_v41 = vsel %vm2597_vm2, %v686_v18, %v682_v38  ;;  %v538_v42 = vsel %vm2646_vm7, %v532_v37, %v2132_v58  ;;  %v536_v43 = vsel %vm2647_vm15, %v2132_v58, %v532_v37  ;;  %v854_v12 = vpop.permute.xlu2 %853 }
  0xba   : > { %v699_v44 = vsel %vm2228_vm10, %v689_v40, 0.0  ;;  %v700_v45 = vsel %vm2232_vm11, %v691_v41, 0.0  ;;  %1674 = vmatpush.msk.msrb.mxu2 %vm2197_vm13, %v538_v42  ;;  %1678 = vmatpush.msk.msrb.mxu3 %vm2201_vm6, %v536_v43  ;;  %vm2648_vm7 = vcmask 1044480   ;;  %v2652_v58 = vmov 0  ;;  %v1709_v40 = vld [vmem:[%s2584_s2 + $0x70] sm:$0xff] }
  0xbb   : > { %1675 = vmatmul.msk.f32.vlgmr.msrb.gmra.mxu2 %vm2602_vm14, %v1671_v39  ;;  %1679 = vmatmul.msk.f32.vlgmr.msrb.gmra.mxu3 %vm2602_vm14, %v1671_v39  ;;  %vm2649_vm15 = vmmov %vm2648_vm7  ;;  %vm2659_vm6 = vcmp.lt.s32.totalorder %v2023_v17, 113  ;;  %v2664_v18 = vmov 0 }
  0xbc   : > { %1691 = vmatpush.msk.msra.mxu2 %vm2648_vm7, %v699_v44  ;;  %1695 = vmatpush.msk.msra.mxu3 %vm2649_vm15, %v700_v45  ;;  %vm2650_vm7 = vcmp.ge.s32.totalorder %v2000_v9, 0  ;;  %v1689_v9 = vld [vmem:[%s2584_s2 + $0x50] sm:$0xff] }
  0xbd   : > { %vm264_vm15 = vmand %vm2107_vm5, %vm2650_vm7 }
  0xbe   : > { %1684 = vmatmul.msk.f32.vlgmr.msra.gmra.mxu0 %vm2602_vm14, %v1681_v46  ;;  %vm265_vm7 = vmand %vm264_vm15, %vm2651_vm4  ;;  %vm2656_vm15 = vcmp.ge.s32.totalorder %v2056_v33, 0 }
  0xbf   : > { %1687 = vmatmul.msk.f32.vlgmr.msra.gmra.mxu1 %vm2602_vm14, %v1681_v46  ;;  %v866_v0 = vsel %vm265_vm7, 1, %v1855_v15  ;;  %vm266_vm4 = vmand %vm2107_vm5, %vm2656_vm15  ;;  %vm2657_vm7 = vcmask 1044480   ;;  %vm2661_vm15 = vcmp.lt.s32.totalorder %v2056_v33, 16 }
  0xc0   : > { %v680_v47 = vpop.permute.xlu0 %679  ;;  %v684_v49 = vpop.permute.xlu1 %683  ;;  %v867_v10 = vperm.slane %v866_v0, 0  ;;  %v868_v11 = vperm.slane %v866_v0, 1  ;;  %vm2660_vm5 = vmmov %vm2659_vm6 }
  0xc1   : > { %v688_v52 = vsel %vm2597_vm2, %v680_v47, %v684_v49  ;;  %v690_v53 = vsel %vm2597_vm2, %v684_v49, %v680_v47  ;;  %vm2600_vm2 = vcmp.lt.s32.totalorder %v2023_v17, 113  ;;  %v947_v30 = vpop.permute.xlu2 %946 }
  0xc2   : > { %1692 = vmatpush.msk.msra.mxu2 %vm2228_vm10, %v688_v52  ;;  %1696 = vmatpush.msk.msra.mxu3 %vm2232_vm11, %v690_v53  ;;  %vm2293_vm10 = vcmp.eq.s32.totalorder %v780_v55, 1  ;;  %vm2297_vm11 = vcmp.eq.s32.totalorder %v781_v56, 1  ;;  %vm2340_vm13 = vcmp.eq.s32.totalorder %v868_v11, 1  ;;  %v1719_v53 = vld [vmem:[%s2584_s2 + $0x80] sm:$0xff] }
  0xc3   : > { %1676 = vmatmul.msk.f32.gmra.mxu2 %vm2602_vm14, %v1672_v50  ;;  %1680 = vmatmul.msk.f32.gmra.mxu3 %vm2602_vm14, %v1672_v50  ;;  %v2653_v58 = vsel %vm2293_vm10, 4294967295, %v2652_v58  ;;  %v2655_v59 = vsel %vm2297_vm11, 4294967295, %v2654_v59  ;;  %v2665_v18 = vsel %vm2340_vm13, 4294967295, %v2664_v18  ;;  %v1710_v50 = vld [vmem:[%s2584_s2 + $0x78] sm:$0xff] }
  0xc6   : > { %1685 = vmatmul.msk.f32.gmra.mxu0 %vm2602_vm14, %v1682_v57 }
  0xc7   : > { %1688 = vmatmul.msk.f32.gmra.mxu1 %vm2602_vm14, %v1682_v57 }
  0xc8   : > { %v773_v62 = vpop.permute.xlu0 %772  ;;  %v767_v63 = vpop.permute.xlu1 %766 }
  0xc9   : > { %v776_v1 = vsel %vm2600_vm2, %v769_v36, %v773_v62  ;;  %v778_v2 = vsel %vm2600_vm2, %v773_v62, %v769_v36  ;;  %vm2658_vm2 = vmmov %vm2657_vm7  ;;  %v775_v14 = vsel %vm2659_vm6, %v767_v63, %v771_v54  ;;  %v777_v48 = vsel %vm2660_vm5, %v771_v54, %v767_v63  ;;  %v1720_v54 = vld [vmem:[%s2584_s2 + $0x88] sm:$0xff] }
  0xca   : > { %v786_v3 = vsel %vm2293_vm10, %v776_v1, 0.0  ;;  %v787_v8 = vsel %vm2297_vm11, %v778_v2, 0.0  ;;  %vm2666_vm6 = vcmask 105472  }
  0xcb   : > { %1693 = vmatmul.msk.f32.vlgmr.msra.gmra.mxu2 %vm2602_vm14, %v1689_v9  ;;  %1697 = vmatmul.msk.f32.vlgmr.msra.gmra.mxu3 %vm2602_vm14, %v1689_v9  ;;  %vm267_vm14 = vmand %vm266_vm4, %vm2661_vm15 }
  0xcc   : > { %1701 = vmatpush.msk.msrb.mxu0 %vm2657_vm7, %v786_v3  ;;  %1705 = vmatpush.msk.msrb.mxu1 %vm2658_vm2, %v787_v8  ;;  %vm2604_vm2 = vcmp.lt.s32.totalorder %v2023_v17, 112  ;;  %vm2336_vm7 = vcmp.eq.s32.totalorder %v867_v10, 1  ;;  %vm2667_vm5 = vmmov %vm2666_vm6  ;;  %v953_v25 = vsel %vm267_vm14, 1, %v1855_v15  ;;  %v1700_v15 = vld [vmem:[%s2584_s2 + $0x68] sm:$0xff] }
  0xcd   : > { %v2663_v16 = vsel %vm2336_vm7, 4294967295, %v2662_v16  ;;  %vm2668_vm4 = vmmov %vm2667_vm5  ;;  %v954_v7 = vperm.slane %v953_v25, 0  ;;  %v955_v29 = vperm.slane %v953_v25, 1 }
  0xce   : > { %1702 = vmatpush.msk.msrb.mxu0 %vm2293_vm10, %v775_v14  ;;  %1706 = vmatpush.msk.msrb.mxu1 %vm2297_vm11, %v777_v48  ;;  %vm2669_vm15 = vmmov %vm2668_vm4  ;;  %vm2680_vm11 = vcmp.lt.s32.totalorder %v2023_v17, 111 }
  0xcf   : > { %1703 = vmatmul.msk.f32.vlgmr.msrb.gmra.mxu0 %vm2666_vm6, %v1699_v13  ;;  %1707 = vmatmul.msk.f32.vlgmr.msrb.gmra.mxu1 %vm2667_vm5, %v1699_v13  ;;  %vm2670_vm6 = vcmask 1044480   ;;  %vm2681_vm10 = vmmov %vm2680_vm11 }
  0xd0   : > { %v856_v33 = vpop.permute.xlu0 %855  ;;  %v860_v23 = vpop.permute.xlu1 %859  ;;  %vm2671_vm14 = vmmov %vm2670_vm6 }
  0xd1   : > { %v863_v26 = vsel %vm2604_vm2, %v856_v33, %v860_v23  ;;  %v865_v27 = vsel %vm2604_vm2, %v860_v23, %v856_v33  ;;  %vm2366_vm2 = vcmp.eq.s32.totalorder %v954_v7, 1 }
  0xd2   : > { %v873_v28 = vsel %vm2336_vm7, %v863_v26, 0.0  ;;  %v874_v4 = vsel %vm2340_vm13, %v865_v27, 0.0 }
  0xd3   : > { %1694 = vmatmul.msk.f32.gmra.mxu2 %vm2668_vm4, %v1690_v24  ;;  %1698 = vmatmul.msk.f32.gmra.mxu3 %vm2669_vm15, %v1690_v24  ;;  %vm2370_vm4 = vcmp.eq.s32.totalorder %v955_v29, 1  ;;  %vm2676_vm15 = vmmov %vm2667_vm5 }
  0xd4   : > { %1711 = vmatpush.msk.msrb.mxu2 %vm2670_vm6, %v873_v28  ;;  %1715 = vmatpush.msk.msrb.mxu3 %vm2671_vm14, %v874_v4  ;;  %vm2677_vm6 = vmmov %vm2667_vm5  ;;  %vm2678_vm14 = vcmp.lt.s32.totalorder %v2023_v17, 112 }
  0xd5   : > { %vm2679_vm5 = vmmov %vm2678_vm14 }
  0xd7   : > { %1704 = vmatmul.msk.f32.gmra.mxu0 %vm2676_vm15, %v1700_v15  ;;  %1708 = vmatmul.msk.f32.gmra.mxu1 %vm2677_vm6, %v1700_v15  ;;  %vm2682_vm15 = vmmov %vm2677_vm6 }
  0xd8   : > { %v858_v38 = vpop.permute.xlu0 %857  ;;  %v943_v39 = vpop.permute.xlu1 %942 }
  0xd9   : > { %v862_v41 = vsel %vm2678_vm14, %v854_v12, %v858_v38  ;;  %v864_v42 = vsel %vm2679_vm5, %v858_v38, %v854_v12  ;;  %v950_v43 = vsel %vm2680_vm11, %v943_v39, %v947_v30  ;;  %v952_v44 = vsel %vm2681_vm10, %v947_v30, %v943_v39  ;;  %vm2683_vm5 = vmmov %vm2677_vm6 }
  0xda   : > { %v960_v45 = vsel %vm2366_vm2, %v950_v43, 0.0  ;;  %v961_v46 = vsel %vm2370_vm4, %v952_v44, 0.0  ;;  %1712 = vmatpush.msk.msrb.mxu2 %vm2336_vm7, %v862_v41  ;;  %1716 = vmatpush.msk.msrb.mxu3 %vm2340_vm13, %v864_v42  ;;  %vm2684_vm11 = vcmask 1044480   ;;  %vm2686_vm14 = vmmov %vm2681_vm10 }
  0xdb   : > { %1713 = vmatmul.msk.f32.vlgmr.msrb.gmra.mxu2 %vm2682_vm15, %v1709_v40  ;;  %1717 = vmatmul.msk.f32.vlgmr.msrb.gmra.mxu3 %vm2683_vm5, %v1709_v40  ;;  %vm2685_vm6 = vmmov %vm2684_vm11 }
  0xdc   : > { %1721 = vmatpush.msk.msra.mxu0 %vm2684_vm11, %v960_v45  ;;  %1725 = vmatpush.msk.msra.mxu1 %vm2685_vm6, %v961_v46  ;;  %vm2687_vm15 = vmmov %vm2683_vm5 }
  0xdd   : > { %vm2688_vm11 = vmmov %vm2683_vm5 }
  0xde   : > { %vm2689_vm6 = vmmov %vm2683_vm5 }
  0xe0   : > { %v941_v47 = vpop.permute.xlu0 %940  ;;  %v945_v49 = vpop.permute.xlu1 %944 }
  0xe1   : > { %v949_v51 = vsel %vm2681_vm10, %v941_v47, %v945_v49  ;;  %v951_v52 = vsel %vm2686_vm14, %v945_v49, %v941_v47  ;;  %vm2690_vm10 = vmmov %vm2683_vm5 }
  0xe2   : > { %1722 = vmatpush.msk.msra.mxu0 %vm2366_vm2, %v949_v51  ;;  %1726 = vmatpush.msk.msra.mxu1 %vm2370_vm4, %v951_v52  ;;  %vm2691_vm14 = vmmov %vm2683_vm5 }
  0xe3   : > { %1714 = vmatmul.msk.f32.gmra.mxu2 %vm2687_vm15, %v1710_v50  ;;  %1718 = vmatmul.msk.f32.gmra.mxu3 %vm2683_vm5, %v1710_v50 }
  0xe4   : > { %1723 = vmatmul.msk.f32.vlgmr.msra.gmra.mxu0 %vm2688_vm11, %v1719_v53  ;;  %1727 = vmatmul.msk.f32.vlgmr.msra.gmra.mxu1 %vm2689_vm6, %v1719_v53 }
  0xec   : > { %1724 = vmatmul.msk.f32.gmra.mxu0 %vm2690_vm10, %v1720_v54  ;;  %1728 = vmatmul.msk.f32.gmra.mxu1 %vm2691_vm14, %v1720_v54 }
 0x11b   : > { %v350_v55 = vpop.f32.mrf.mxu0  ;;  %v373_v56 = vpop.f32.mrf.mxu1 }
 0x123   : > { %v353_v57 = vpop.f32.mrf.mxu0  ;;  %v376_v62 = vpop.f32.mrf.mxu1 }
 0x126   : > { %v431_v63 = vpop.f32.mrf.mxu3  ;;  %v408_v9 = vpop.f32.mrf.mxu2 }
 0x127   : > { %v409_v39 = vadd.f32 %v408_v9, %v350_v55  ;;  %v432_v42 = vadd.f32 %v431_v63, %v373_v56 }
 0x12b   : > { %v491_v0 = vpop.f32.mrf.mxu0 }
 0x12c   : > { %v514_v1 = vpop.f32.mrf.mxu1  ;;  %v520_v43 = vadd.f32 %v491_v0, %v409_v39 }
 0x12d   : > { %v521_v44 = vadd.f32 %v514_v1, %v432_v42 }
 0x12e   : > { %v434_v2 = vpop.f32.mrf.mxu3 }
 0x12f   : > { %v435_v3 = vadd.f32 %v434_v2, %v376_v62  ;;  %v411_v8 = vpop.f32.mrf.mxu2 }
 0x130   : > { %v412_v10 = vadd.f32 %v411_v8, %v353_v57 }
 0x133   : > { %v494_v11 = vpop.f32.mrf.mxu0 }
 0x134   : > { %v522_v12 = vadd.f32 %v494_v11, %v412_v10  ;;  %v517_v13 = vpop.f32.mrf.mxu1 }
 0x135   : > { %v523_v14 = vadd.f32 %v517_v13, %v435_v3 }
 0x13b   : > { %v643_v48 = vpop.f32.mrf.mxu0 }
 0x13c   : > { %v666_v33 = vpop.f32.mrf.mxu1 }
 0x13e   : > { %v578_v23 = vpop.f32.mrf.mxu2  ;;  %v601_v24 = vpop.f32.mrf.mxu3 }
 0x13f   : > { %v607_v45 = vadd.f32 %v578_v23, %v520_v43  ;;  %v608_v46 = vadd.f32 %v601_v24, %v521_v44 }
 0x141   : > { %v672_v52 = vadd.f32 %v643_v48, %v607_v45  ;;  %v673_v53 = vadd.f32 %v666_v33, %v608_v46 }
 0x143   : > { %v646_v25 = vpop.f32.mrf.mxu0 }
 0x144   : > { %v669_v26 = vpop.f32.mrf.mxu1 }
 0x146   : > { %v581_v27 = vpop.f32.mrf.mxu2  ;;  %v604_v28 = vpop.f32.mrf.mxu3 }
 0x147   : > { %v609_v4 = vadd.f32 %v581_v27, %v522_v12  ;;  %v610_v7 = vadd.f32 %v604_v28, %v523_v14 }
 0x149   : > { %v674_v29 = vadd.f32 %v646_v25, %v609_v4  ;;  %v675_v15 = vadd.f32 %v669_v26, %v610_v7 }
 0x14c   : > { %v817_v30 = vpop.f32.mrf.mxu0  ;;  %v840_v38 = vpop.f32.mrf.mxu1 }
 0x14e   : > { %v730_v40 = vpop.f32.mrf.mxu2  ;;  %v753_v41 = vpop.f32.mrf.mxu3 }
 0x14f   : > { %v759_v62 = vadd.f32 %v730_v40, %v672_v52  ;;  %v760_v2 = vadd.f32 %v753_v41, %v673_v53 }
 0x151   : > { %v846_v9 = vadd.f32 %v817_v30, %v759_v62  ;;  %v847_v56 = vadd.f32 %v840_v38, %v760_v2  ;;  %v1066_v2 = vld [vmem:[%s2585_s3] sm:$0xff] }
 0x154   : > { %v820_v47 = vpop.f32.mrf.mxu0  ;;  %v843_v49 = vpop.f32.mrf.mxu1 }
 0x156   : > { %v733_v50 = vpop.f32.mrf.mxu2  ;;  %v756_v51 = vpop.f32.mrf.mxu3 }
 0x157   : > { %v761_v54 = vadd.f32 %v733_v50, %v674_v29  ;;  %v762_v57 = vadd.f32 %v756_v51, %v675_v15 }
 0x159   : > { %v2422_v3 = vadd.f32 %v820_v47, %v761_v54  ;;  %v2424_v55 = vadd.f32 %v843_v49, %v762_v57 }
 0x15e   : > { %v904_v63 = vpop.f32.mrf.mxu2  ;;  %v927_v0 = vpop.f32.mrf.mxu3 }
 0x15f   : > { %v933_v1 = vadd.f32 %v904_v63, %v846_v9  ;;  %v934_v8 = vadd.f32 %v927_v0, %v847_v56 }
 0x161   : > { %v991_v10 = vpop.f32.mrf.mxu0  ;;  %v1014_v11 = vpop.f32.mrf.mxu1 }
 0x162   : > { %v1020_v12 = vadd.f32 %v991_v10, %v933_v1  ;;  %v1021_v13 = vadd.f32 %v1014_v11, %v934_v8 }
 0x164   : > { %v1729_v14 = vmul.f32 -1.442695, %v1020_v12  ;;  %v1730_v48 = vmul.f32 -1.442695, %v1021_v13 }
 0x166   : > { %1809 = vpow2.f32 %v1729_v14  ;;  %v930_v36 = vpop.f32.mrf.mxu3 }
 0x167   : > { %1811 = vpow2.f32 %v1730_v48 }
 0x169   : > { %v994_v37 = vpop.f32.mrf.mxu0 }
 0x16c   : > { %v1810_v33 = vpop.eup %1809 }
 0x16d   : > { %v1812_v23 = vpop.eup %1811  ;;  %v1030_v24 = vadd.f32 1.0, %v1810_v33 }
 0x16e   : > { %v1031_v25 = vadd.f32 1.0, %v1812_v23  ;;  %v1750_v23 = vld [vmem:[%s2585_s3 + $0x20] sm:$0xff] }
 0x16f   : > { %1813 = vrcp.f32 %v1030_v24  ;;  %v1043_v29 = vand.u32 2147483648, %v1030_v24  ;;  %v1041_v38 = vand.u32 2147483647, %v1030_v24  ;;  %vm1037_vm11 = vweird.f32 %v1030_v24 }
 0x170   : > { %1815 = vrcp.f32 %v1031_v25  ;;  %v1058_v39 = vand.u32 2147483648, %v1031_v25  ;;  %v1056_v41 = vand.u32 2147483647, %v1031_v25  ;;  %vm1052_vm10 = vweird.f32 %v1031_v25 }
 0x171   : > { %v1044_v43 = vor.u32 1.1754944e-38, %v1043_v29  ;;  %vm1042_vm14 = vcmp.eq.f32.partialorder %v1041_v38, 8.507059e+37 }
 0x172   : > { %v1059_v46 = vor.u32 1.1754944e-38, %v1058_v39  ;;  %vm1057_vm7 = vcmp.eq.f32.partialorder %v1056_v41, 8.507059e+37 }
 0x175   : > { %v1814_v26 = vpop.eup %1813 }
 0x176   : > { %v1816_v27 = vpop.eup %1815  ;;  %v1033_v28 = vmul.f32 %v1814_v26, %v1030_v24  ;;  %vm1038_vm15 = vweird.f32 %v1814_v26 }
 0x177   : > { %v1048_v4 = vmul.f32 %v1816_v27, %v1031_v25  ;;  %vm1053_vm5 = vweird.f32 %v1816_v27  ;;  %vm1039_vm6 = vmor %vm1037_vm11, %vm1038_vm15  ;;  %v1753_v25 = vld [vmem:[%s2585_s3 + $0x28] sm:$0xff] }
 0x178   : > { %v1034_v7 = vsub.f32 1.0, %v1033_v28  ;;  %vm1054_vm13 = vmor %vm1052_vm10, %vm1053_vm5  ;;  %vm2694_vm5 = vcmp.lt.s32.totalorder %v2023_v17, 16  ;;  %vm2703_vm10 = vnez %v2638_v22 }
 0x179   : > { %v1049_v15 = vsub.f32 1.0, %v1048_v4  ;;  %vm2695_vm11 = vmmov %vm2694_vm5 }
 0x17a   : > { %v1035_v30 = vmul.f32 %v1814_v26, %v1034_v7  ;;  %v1763_v7 = vld [vmem:[%s2585_s3 + $0x38] sm:$0xff] }
 0x17b   : > { %v1050_v40 = vmul.f32 %v1816_v27, %v1049_v15 }
 0x17c   : > { %v1036_v42 = vadd.f32 %v1814_v26, %v1035_v30  ;;  %v1768_v30 = vld [vmem:[%s2585_s3 + $0x40] sm:$0xff] }
 0x17d   : > { %v1051_v44 = vadd.f32 %v1816_v27, %v1050_v40 }
 0x17e   : > { %v1040_v45 = vsel %vm1039_vm6, %v1814_v26, %v1036_v42  ;;  %vm2702_vm6 = vnez %v2636_v19  ;;  %v936_v42 = vadd.f32 %v930_v36, %v2424_v55 }
 0x17f   : > { %v2426_v47 = vsel %vm1042_vm14, %v1044_v43, %v1040_v45  ;;  %v1055_v49 = vsel %vm1054_vm13, %v1816_v27, %v1051_v44  ;;  %vm1075_vm13 = vcmask 64512   ;;  %vm2704_vm14 = vnez %v2643_v31 }
 0x180   : > { %v1062_v50 = vperm.slane %v2426_v47, 0  ;;  %v2429_v51 = vsel %vm1057_vm7, %v1059_v46, %v1055_v49  ;;  %vm2692_vm7 = vcmp.lt.s32.totalorder %v2023_v17, 17 }
 0x181   : > { %v1063_v52 = vperm.slane %v2429_v51, 0  ;;  %vm2693_vm15 = vmmov %vm2692_vm7 }
 0x182   : > { %v1064_v53 = vmul.f32 %v1062_v50, %v1924_v5 }
 0x183   : > { %v1065_v54 = vmul.f32 %v1063_v52, %v1933_v6 }
 0x184   : > { %1123 = vrot.lane.b32.xlu1 %v1064_v53, %s1847_s7  ;;  %1067 = vrot.lane.b32.xlu2 %v1064_v53, %s1848_s8 }
 0x185   : > { %1069 = vrot.lane.b32.xlu0 %v1065_v54, %s1848_s8 }
 0x18c   : > { %1180 = vrot.lane.b32.xlu1 %v1065_v54, %s1849_s9  ;;  %1125 = vrot.lane.b32.xlu2 %v1065_v54, %s1847_s7  ;;  %s224_s7 = scalar_lea.vmem %s2586_s4, %s1641_s17 }
 0x18d   : > { %1178 = vrot.lane.b32.xlu0 %v1064_v53, %s1849_s9 }
 0x194   : > { %1335 = vrot.lane.b32.xlu1 %v1064_v53, %s1851_s11  ;;  %1233 = vrot.lane.b32.xlu2 %v1064_v53, %s1850_s10 }
 0x195   : > { %1235 = vrot.lane.b32.xlu0 %v1065_v54, %s1850_s10 }
 0x19c   : > { %1392 = vrot.lane.b32.xlu1 %v1065_v54, %s1852_s12  ;;  %1337 = vrot.lane.b32.xlu2 %v1065_v54, %s1851_s11 }
 0x19d   : > { %1390 = vrot.lane.b32.xlu0 %v1064_v53, %s1852_s12 }
 0x1a4   : > { %1500 = vrot.lane.b32.xlu1 %v1064_v53, %s1854_s14  ;;  %1445 = vrot.lane.b32.xlu2 %v1064_v53, %s1853_s13 }
 0x1a5   : > { %1447 = vrot.lane.b32.xlu0 %v1065_v54, %s1853_s13 }
 0x1ac   : > { %1502 = vrot.lane.b32.xlu2 %v1065_v54, %s1854_s14 }
 0x1de   : > { %v1068_v5 = vpop.permute.xlu2 %1067 }
 0x1e6   : > { %v1126_v6 = vpop.permute.xlu2 %1125 }
 0x1ee   : > { %v1234_v9 = vpop.permute.xlu2 %1233 }
 0x1f6   : > { %v1124_v57 = vpop.permute.xlu1 %1123  ;;  %v1338_v35 = vpop.permute.xlu2 %1337 }
 0x1f7   : > { %v1070_v62 = vpop.permute.xlu0 %1069  ;;  %v1127_v0 = vsel %vm2694_vm5, %v1124_v57, %v1126_v6  ;;  %v1128_v1 = vsel %vm2695_vm11, %v1126_v6, %v1124_v57  ;;  %vm2708_vm11 = vnez %v2653_v58 }
 0x1f8   : > { %v1071_v56 = vsel %vm2692_vm7, %v1068_v5, %v1070_v62  ;;  %v1072_v63 = vsel %vm2693_vm15, %v1070_v62, %v1068_v5  ;;  %vm2705_vm7 = vnez %v2645_v32  ;;  %vm2706_vm15 = vcmp.lt.s32.totalorder %v2023_v17, 113  ;;  %v1758_v32 = vld [vmem:[%s2585_s3 + $0x30] sm:$0xff] }
 0x1f9   : > { %1731 = vmatpush.msk.msra.mxu2 %vm2026_vm8, %v1072_v63  ;;  %1733 = vmatpush.msk.msra.mxu3 %vm2030_vm9, %v1071_v56  ;;  %vm2696_vm8 = vcmp.lt.s32.totalorder %v2023_v17, 15  ;;  %vm2707_vm5 = vmmov %vm2706_vm15 }
 0x1fa   : > { %1732 = vmatmul.msk.f32.vlgmr.msra.gmra.mxu2 %vm1075_vm13, %v1066_v2  ;;  %1734 = vmatmul.msk.f32.vlgmr.msra.gmra.mxu3 %vm1075_vm13, %v1066_v2  ;;  %vm2697_vm9 = vmmov %vm2696_vm8 }
 0x1fb   : > { %1736 = vmatpush.msk.msrb.mxu2 %vm2059_vm0, %v1128_v1  ;;  %1738 = vmatpush.msk.msrb.mxu3 %vm2063_vm1, %v1127_v0  ;;  %vm2698_vm0 = vcmp.lt.s32.totalorder %v2023_v17, 1 }
 0x1fc   : > { %vm2699_vm1 = vmmov %vm2698_vm0 }
 0x1fe   : > { %v1181_v8 = vpop.permute.xlu1 %1180  ;;  %v1446_v24 = vpop.permute.xlu2 %1445 }
 0x1ff   : > { %v1179_v10 = vpop.permute.xlu0 %1178 }
 0x200   : > { %v1182_v21 = vsel %vm2696_vm8, %v1179_v10, %v1181_v8  ;;  %v1183_v11 = vsel %vm2697_vm9, %v1181_v8, %v1179_v10  ;;  %vm2709_vm8 = vnez %v2655_v59  ;;  %vm2710_vm9 = vcmp.lt.s32.totalorder %v2023_v17, 111 }
 0x201   : > { %1741 = vmatpush.msk.msrb.mxu0 %vm2149_vm12, %v1183_v11  ;;  %1743 = vmatpush.msk.msrb.mxu1 %vm2153_vm3, %v1182_v21  ;;  %vm2700_vm12 = vcmp.lt.s32.totalorder %v2023_v17, 127 }
 0x202   : > { %1737 = vmatmul.msk.f32.vlgmr.msrb.gmra.mxu2 %vm1075_vm13, %v1735_v20  ;;  %1739 = vmatmul.msk.f32.vlgmr.msrb.gmra.mxu3 %vm1075_vm13, %v1735_v20  ;;  %vm2701_vm3 = vmmov %vm2700_vm12 }
 0x203   : > { %1306 = vmatpush.msra.mxu0 %v1064_v53  ;;  %1326 = vmatpush.msra.mxu1 %v1065_v54 }
 0x204   : > { %1742 = vmatmul.msk.f32.vlgmr.msrb.gmra.mxu0 %vm1075_vm13, %v1740_v34  ;;  %1744 = vmatmul.msk.f32.vlgmr.msrb.gmra.mxu1 %vm1075_vm13, %v1740_v34 }
 0x206   : > { %v1336_v60 = vpop.permute.xlu1 %1335  ;;  %v1503_v27 = vpop.permute.xlu2 %1502 }
 0x207   : > { %v1236_v12 = vpop.permute.xlu0 %1235  ;;  %v1339_v48 = vsel %vm2700_vm12, %v1336_v60, %v1338_v35  ;;  %v1340_v33 = vsel %vm2701_vm3, %v1338_v35, %v1336_v60  ;;  %vm2714_vm3 = vnez %v2663_v16  ;;  %v1017_v16 = vpop.f32.mrf.mxu1 }
 0x208   : > { %v1237_v13 = vsel %vm2698_vm0, %v1234_v9, %v1236_v12  ;;  %v1238_v14 = vsel %vm2699_vm1, %v1236_v12, %v1234_v9  ;;  %vm2711_vm0 = vmmov %vm2710_vm9  ;;  %vm2712_vm1 = vcmp.lt.s32.totalorder %v2023_v17, 112  ;;  %v907_v17 = vpop.f32.mrf.mxu2  ;;  %v1023_v46 = vadd.f32 %v1017_v16, %v936_v42 }
 0x209   : > { %1746 = vmatpush.msk.msra.mxu2 %vm2702_vm6, %v1238_v14  ;;  %1748 = vmatpush.msk.msra.mxu3 %vm2703_vm10, %v1237_v13  ;;  %vm2713_vm12 = vmmov %vm2712_vm1  ;;  %vm2715_vm6 = vnez %v2665_v18  ;;  %v935_v41 = vadd.f32 %v907_v17, %v2422_v3 }
 0x20a   : > { %1747 = vmatmul.msk.f32.vlgmr.msra.gmra.mxu2 %vm1075_vm13, %v1745_v61  ;;  %1749 = vmatmul.msk.f32.vlgmr.msra.gmra.mxu3 %vm1075_vm13, %v1745_v61 }
 0x20b   : > { %1754 = vmatpush.msk.msrb.mxu2 %vm2704_vm14, %v1339_v48  ;;  %1756 = vmatpush.msk.msrb.mxu3 %vm2705_vm7, %v1340_v33  ;;  %v1022_v45 = vadd.f32 %v994_v37, %v935_v41  ;;  %v1559_v33 = vsub.f32 1.0, %v2426_v47 }
 0x20c   : > { %1751 = vmatmul.msk.f32.vlgmr.msra.gmra.mxu0 %vm1075_vm13, %v1750_v23  ;;  %1752 = vmatmul.msk.f32.vlgmr.msra.gmra.mxu1 %vm1075_vm13, %v1750_v23  ;;  %v1560_v23 = vsub.f32 1.0, %v2429_v51 }
 0x20e   : > { %v1393_v19 = vpop.permute.xlu1 %1392 }
 0x20f   : > { %v1391_v22 = vpop.permute.xlu0 %1390 }
 0x210   : > { %v1394_v26 = vsel %vm2706_vm15, %v1391_v22, %v1393_v19  ;;  %v1395_v31 = vsel %vm2707_vm5, %v1393_v19, %v1391_v22  ;;  %v1556_v19 = vperm.slane %v2429_v51, 1  ;;  %v1561_v22 = vperm.slane %v1559_v33, 1 }
 0x211   : > { %1759 = vmatpush.msk.msrb.mxu0 %vm2708_vm11, %v1394_v26  ;;  %1761 = vmatpush.msk.msrb.mxu1 %vm2709_vm8, %v1395_v31  ;;  %v1562_v26 = vperm.slane %v1560_v23, 1 }
 0x212   : > { %1755 = vmatmul.msk.f32.vlgmr.msrb.gmra.mxu2 %vm1075_vm13, %v1753_v25  ;;  %1757 = vmatmul.msk.f32.vlgmr.msrb.gmra.mxu3 %vm1075_vm13, %v1753_v25 }
 0x214   : > { %1760 = vmatmul.msk.f32.vlgmr.msrb.gmra.mxu0 %vm1075_vm13, %v1758_v32  ;;  %1762 = vmatmul.msk.f32.vlgmr.msrb.gmra.mxu1 %vm1075_vm13, %v1758_v32  ;;  %v1821_v32 = vld [vmem:[%s1918_s6] sm:$0xff] }
 0x216   : > { %v1501_v28 = vpop.permute.xlu1 %1500 }
 0x217   : > { %v1448_v4 = vpop.permute.xlu0 %1447  ;;  %v1504_v58 = vsel %vm2710_vm9, %v1501_v28, %v1503_v27  ;;  %v1505_v59 = vsel %vm2711_vm0, %v1503_v27, %v1501_v28 }
 0x218   : > { %v1449_v29 = vsel %vm2712_vm1, %v1446_v24, %v1448_v4  ;;  %v1450_v15 = vsel %vm2713_vm12, %v1448_v4, %v1446_v24  ;;  %1769 = vmatpush.msk.msra.mxu0 %vm2366_vm2, %v1504_v58  ;;  %1771 = vmatpush.msk.msra.mxu1 %vm2370_vm4, %v1505_v59  ;;  %v1555_v24 = vperm.slane %v2426_v47, 1  ;;  %v1822_v4 = vld [vmem:[%s1918_s6 + $0x8] sm:$0xff] }
 0x219   : > { %1764 = vmatpush.msk.msra.mxu2 %vm2714_vm3, %v1449_v29  ;;  %1766 = vmatpush.msk.msra.mxu3 %vm2715_vm6, %v1450_v15  ;;  %v1558_v58 = vmul.f32 %v1822_v4, %v1556_v19 }
 0x21a   : > { %1765 = vmatmul.msk.f32.vlgmr.msra.gmra.mxu2 %vm1075_vm13, %v1763_v7  ;;  %1767 = vmatmul.msk.f32.vlgmr.msra.gmra.mxu3 %vm1075_vm13, %v1763_v7  ;;  %v1557_v27 = vmul.f32 %v1821_v32, %v1555_v24 }
 0x21c   : > { %1770 = vmatmul.msk.f32.vlgmr.msra.gmra.mxu0 %vm1075_vm13, %v1768_v30  ;;  %1772 = vmatmul.msk.f32.vlgmr.msra.gmra.mxu1 %vm1075_vm13, %v1768_v30 }
 0x27d   : > { %v1096_v38 = vpop.f32.mrf.mxu2  ;;  %v1116_v39 = vpop.f32.mrf.mxu3 }
 0x27e   : > { %v1119_v52 = vadd.f32 %v1096_v38, %v1022_v45  ;;  %v1120_v53 = vadd.f32 %v1116_v39, %v1023_v46 }
 0x281   : > { %v1206_v18 = vpop.f32.mrf.mxu0  ;;  %v1226_v40 = vpop.f32.mrf.mxu1 }
 0x285   : > { %v1151_v43 = vpop.f32.mrf.mxu2  ;;  %v1171_v44 = vpop.f32.mrf.mxu3 }
 0x286   : > { %v1174_v54 = vadd.f32 %v1151_v43, %v1119_v52  ;;  %v1175_v5 = vadd.f32 %v1171_v44, %v1120_v53 }
 0x288   : > { %v1229_v62 = vadd.f32 %v1206_v18, %v1174_v54  ;;  %v1230_v2 = vadd.f32 %v1226_v40, %v1175_v5 }
 0x289   : > { %v1308_v49 = vpop.f32.mrf.mxu0  ;;  %v1328_v50 = vpop.f32.mrf.mxu1 }
 0x28d   : > { %v1261_v6 = vpop.f32.mrf.mxu2  ;;  %v1281_v57 = vpop.f32.mrf.mxu3 }
 0x28e   : > { %v1284_v9 = vadd.f32 %v1261_v6, %v1229_v62  ;;  %v1285_v56 = vadd.f32 %v1281_v57, %v1230_v2 }
 0x290   : > { %v1331_v1 = vadd.f32 %v1308_v49, %v1284_v9  ;;  %v1332_v8 = vadd.f32 %v1328_v50, %v1285_v56 }
 0x291   : > { %v1418_v3 = vpop.f32.mrf.mxu0  ;;  %v1438_v63 = vpop.f32.mrf.mxu1 }
 0x295   : > { %v1363_v55 = vpop.f32.mrf.mxu2  ;;  %v1383_v0 = vpop.f32.mrf.mxu3 }
 0x296   : > { %v1386_v10 = vadd.f32 %v1363_v55, %v1331_v1  ;;  %v1387_v20 = vadd.f32 %v1383_v0, %v1332_v8 }
 0x298   : > { %v1441_v21 = vadd.f32 %v1418_v3, %v1386_v10  ;;  %v1442_v11 = vadd.f32 %v1438_v63, %v1387_v20 }
 0x299   : > { %v1528_v34 = vpop.f32.mrf.mxu0  ;;  %v1548_v35 = vpop.f32.mrf.mxu1 }
 0x29d   : > { %v1473_v60 = vpop.f32.mrf.mxu2  ;;  %v1493_v12 = vpop.f32.mrf.mxu3 }
 0x29e   : > { %v1496_v61 = vadd.f32 %v1473_v60, %v1441_v21  ;;  %v1497_v13 = vadd.f32 %v1493_v12, %v1442_v11 }
 0x2a0   : > { %v1551_v14 = vadd.f32 %v1528_v34, %v1496_v61  ;;  %v1552_v48 = vadd.f32 %v1548_v35, %v1497_v13 }
 0x2a2   : > { %1817 = vtanh.f32 %v1551_v14 }
 0x2a3   : > { %1819 = vtanh.f32 %v1552_v48 }
 0x2a8   : > { %v1818_v25 = vpop.eup %1817 }
 0x2a9   : > { %v1820_v31 = vpop.eup %1819  ;;  %v1563_v28 = vmul.f32 %v1818_v25, %v1561_v22 }
 0x2aa   : > { %v1564_v59 = vmul.f32 %v1820_v31, %v1562_v26 }
 0x2ab   : > { %v1565_v7 = vadd.f32 %v1563_v28, %v1557_v27 }
 0x2ac   : > { %v1566_v29 = vadd.f32 %v1564_v59, %v1558_v58 }
 0x2ad   : > { %1567 = vst [vmem:[%s224_s7] sm:$0xff] %v1565_v7 }
 0x2ae   : > { %1568 = vst [vmem:[%s224_s7 + $0x8] sm:$0xff] %v1566_v29 }
 0x2af PF: > { %p11_p9 = scmp.ge.s32.totalorder %s1898_s19, 4   ;;  %s2716_s15 = smov %s1841_s16 }
 0x2b0   : > { %s2717_s16 = smov %s1907_s22  ;;  %s2718_s17 = smov %s1898_s19 }
 0x2b1   :  { %13 = sbr.rel (!%p11_p9) target bundleno = 2 (0x2), region = 111 }

</bundles_post_ra>
